<compile_context>
chip_gen: v7x
topology: tpu7x:2x2x1
jax: 0.10.0
libtpu: 0.0.40
codegen_flags: <defaults>
</compile_context>

<pallas_src>
import functools

import jax
import jax.numpy as jnp
from jax.experimental import pallas as pl
from jax.experimental.pallas import tpu as pltpu


def conv_gemm_relu_kernel(x_ref, w_ref, b_ref, o_ref):
    # (TM, Kp) bf16 @ (Kp, Cp) bf16 -> f32 on the MXU; bias + ReLU on the VPU.
    acc = jnp.dot(x_ref[...], w_ref[...], preferred_element_type=jnp.float32)
    acc = acc + b_ref[0:1, :]                       # (1, Cp) broadcasts over TM rows
    o_ref[...] = jnp.maximum(acc, 0.0).astype(o_ref.dtype)


def _round_up(x, m):
    return (x + m - 1) // m * m


@functools.partial(jax.jit, static_argnames=("stride", "padding", "tm"))
def conv2d_relu(x, w, b, *, stride=4, padding=2, tm=768):
    """x: (N, C_in, H, W), w: (C_out, C_in, KH, KW), b: (C_out,) -> (N, C_out, OH, OW)."""
    N, C, H, W = x.shape
    C_out, _, KH, KW = w.shape
    OH = (H + 2 * padding - KH) // stride + 1
    OW = (W + 2 * padding - KW) // stride + 1

    # ---- layout-friendly im2col (bf16, NHWC, K-order = (kh, kw, c)) ----
    # Pad width so the flattened (W*C) axis splits evenly into stride*C blocks
    # and the last window fits.  For 224/11/4/2 this is exactly 228 (no extra).
    n_shift = -(-KW // stride)                                  # ceil(KW/stride) = 3
    Wq = max(_round_up(W + 2 * padding, stride), (OW - 1 + n_shift) * stride)
    Hq = H + 2 * padding

    xb = x.astype(jnp.bfloat16)
    x_pad = jnp.pad(xb, ((0, 0), (0, 0), (padding, padding),
                         (padding, Wq - W - padding)))
    x_nhwc = x_pad.transpose(0, 2, 3, 1)                        # (N, Hq, Wq, C), one small transpose

    SC = stride * C                                             # 12: one output-stride of (w, c)
    nb = Wq // stride
    blocks = x_nhwc.reshape(N, Hq, nb, SC)                      # regroup (W, C) -> (nb, stride*C)

    win = n_shift * SC                                          # 36 cols per kh (33 live + 3 dead)
    chunks = []
    for kh in range(KH):
        rows = blocks[:, kh:kh + stride * (OH - 1) + 1:stride]  # (N, OH, nb, SC) strided rows
        for s in range(n_shift):
            chunks.append(rows[:, :, s:s + OW, :])              # (N, OH, OW, SC) contiguous minor
    xm = jnp.concatenate(chunks, axis=-1)                       # (N, OH, OW, KH*win), lane-dense
    M = N * OH * OW
    K = KH * win
    xm = xm.reshape(M, K)                                       # leading-dim merge, layout-trivial

    # Weights in matching (kh, kw, c) order; dead columns get zero rows.
    wt = w.astype(jnp.bfloat16).transpose(2, 3, 1, 0).reshape(KH, KW * C, C_out)
    wk = jnp.zeros((KH, win, C_out), jnp.bfloat16).at[:, :KW * C, :].set(wt)
    wk = wk.reshape(K, C_out)

    TM = min(tm, _round_up(M, 8))                               # don't over-pad tiny inputs
    Mp = _round_up(M, TM)                                       # full, unmasked output tiles
    Kp = _round_up(K, 128)
    Cp = _round_up(C_out, 128)                                  # keep 128 lanes (unmasked vst)

    xm_p = jnp.pad(xm, ((0, Mp - M), (0, Kp - K)))
    wm_p = jnp.zeros((Kp, Cp), jnp.bfloat16).at[:K, :C_out].set(wk)
    b_p = jnp.zeros((8, Cp), jnp.float32).at[:, :C_out].set(
        jnp.broadcast_to(b.astype(jnp.float32)[None, :], (8, C_out)))

    out = pl.pallas_call(
        conv_gemm_relu_kernel,
        out_shape=jax.ShapeDtypeStruct((Mp, Cp), jnp.bfloat16),
        grid=(Mp // TM,),
        in_specs=[
            pl.BlockSpec((TM, Kp), lambda i: (i, 0)),   # X tiles streamed / double-buffered
            pl.BlockSpec((Kp, Cp), lambda i: (0, 0)),   # weights resident in VMEM
            pl.BlockSpec((8, Cp), lambda i: (0, 0)),    # bias resident (aligned 8-row block)
        ],
        out_specs=pl.BlockSpec((TM, Cp), lambda i: (i, 0)),
        compiler_params=pltpu.CompilerParams(
            dimension_semantics=("parallel",),          # even M split across v7x's 2 TCs
            vmem_limit_bytes=32 * 1024 * 1024,          # footprint ~2.5 MB, lots of headroom
        ),
    )(xm_p, wm_p, b_p)

    # TODO(synk): drop this NCHW/f32 conversion if the consumer takes NHWC bf16.
    y = out[:M, :C_out].reshape(N, OH, OW, C_out)
    return y.transpose(0, 3, 1, 2).astype(jnp.float32)


if __name__ == "__main__":
    key = jax.random.PRNGKey(0)
    kx, kw, kb = jax.random.split(key, 3)

    # Shapes from the module spec: Conv2d(3, 64, k=11, s=4, p=2) on 1x3x224x224 -> 1x64x55x55.
    x = jax.random.normal(kx, (1, 3, 224, 224), dtype=jnp.float32)
    w = jax.random.normal(kw, (64, 3, 11, 11), dtype=jnp.float32) * 0.05
    b = jax.random.normal(kb, (64,), dtype=jnp.float32) * 0.05

    y = jax.block_until_ready(conv2d_relu(x, w, b))
    assert y.shape == (1, 64, 55, 55), y.shape

    # Reference: same bf16-cast operands through XLA conv (f32 accumulate) + bias + ReLU.
    ref = jax.lax.conv_general_dilated(
        x.astype(jnp.bfloat16), w.astype(jnp.bfloat16),
        window_strides=(4, 4), padding=((2, 2), (2, 2)),
        dimension_numbers=("NCHW", "OIHW", "NCHW"),
        preferred_element_type=jnp.float32)
    ref = jnp.maximum(ref + b[None, :, None, None], 0.0)
    max_err = float(jnp.max(jnp.abs(y - ref)))
    assert jnp.allclose(y, ref, atol=3e-2, rtol=3e-2), max_err

    print("KERNEL_OK")
</pallas_src>

<mosaic_0001>
module attributes {stable_mosaic.version = 11 : i64} {
  func.func @conv_gemm_relu_kernel(%arg0: i32, %arg1: memref<768x512xbf16, #tpu.memory_space<vmem>>, %arg2: memref<512x128xbf16, #tpu.memory_space<vmem>>, %arg3: memref<8x128xf32, #tpu.memory_space<vmem>>, %arg4: memref<768x128xbf16, #tpu.memory_space<vmem>>) attributes {dimension_semantics = [#tpu.dimension_semantics<parallel>], iteration_bounds = array<i64: 4>, scalar_prefetch = 0 : i64, scratch_operands = 0 : i64, tpu.core_type = #tpu.core_type<tc>, window_params = [{transform_indices = @transform_0, window_bounds = array<i64: 768, 512>}, {pipeline_mode = #tpu.pipeline_mode<synchronous>, transform_indices = @transform_1, window_bounds = array<i64: 512, 128>}, {pipeline_mode = #tpu.pipeline_mode<synchronous>, transform_indices = @transform_2, window_bounds = array<i64: 8, 128>}, {transform_indices = @transform_3, window_bounds = array<i64: 768, 128>}]} {
    %c0 = arith.constant 0 : index
    %c0_0 = arith.constant 0 : index
    %0 = vector.load %arg1[%c0, %c0_0] : memref<768x512xbf16, #tpu.memory_space<vmem>>, vector<768x512xbf16>
    %c0_1 = arith.constant 0 : index
    %c0_2 = arith.constant 0 : index
    %1 = vector.load %arg2[%c0_1, %c0_2] : memref<512x128xbf16, #tpu.memory_space<vmem>>, vector<512x128xbf16>
    %cst = arith.constant dense<0.000000e+00> : vector<768x128xf32>
    %2 = tpu.matmul %0, %1, %cst {dimension_numbers = #tpu.dot_dimension_numbers<[1], [0], [0], [1], [0, 0, 1, 1], [], []>} : vector<768x512xbf16>, vector<512x128xbf16>, vector<768x128xf32> -> vector<768x128xf32>
    %c0_3 = arith.constant 0 : index
    %c0_4 = arith.constant 0 : index
    %3 = vector.load %arg3[%c0_3, %c0_4] : memref<8x128xf32, #tpu.memory_space<vmem>>, vector<1x128xf32>
    %4 = vector.broadcast %3 : vector<1x128xf32> to vector<768x128xf32>
    %5 = arith.addf %2, %4 : vector<768x128xf32>
    %cst_5 = arith.constant 0.000000e+00 : f32
    %6 = vector.broadcast %cst_5 : f32 to vector<768x128xf32>
    %7 = arith.maximumf %5, %6 : vector<768x128xf32>
    %8 = arith.truncf %7 : vector<768x128xf32> to vector<768x128xbf16>
    %c0_6 = arith.constant 0 : index
    %c0_7 = arith.constant 0 : index
    %9 = vector.load %arg4[%c0_6, %c0_7] : memref<768x128xbf16, #tpu.memory_space<vmem>>, vector<768x128xbf16>
    tpu.vector_store %arg4[%c0_6, %c0_7], %8 {strides = array<i32>} : memref<768x128xbf16, #tpu.memory_space<vmem>>, vector<768x128xbf16>,
    return
  }
  func.func @transform_0(%arg0: i32) -> (i32, i32) {
    %c0_i32 = arith.constant 0 : i32
    %c0_i32_0 = arith.constant 0 : i32
    return %arg0, %c0_i32 : i32, i32
  }
  func.func @transform_1(%arg0: i32) -> (i32, i32) {
    %c0_i32 = arith.constant 0 : i32
    %c0_i32_0 = arith.constant 0 : i32
    %c0_i32_1 = arith.constant 0 : i32
    return %c0_i32, %c0_i32_0 : i32, i32
  }
  func.func @transform_2(%arg0: i32) -> (i32, i32) {
    %c0_i32 = arith.constant 0 : i32
    %c0_i32_0 = arith.constant 0 : i32
    %c0_i32_1 = arith.constant 0 : i32
    return %c0_i32, %c0_i32_0 : i32, i32
  }
  func.func @transform_3(%arg0: i32) -> (i32, i32) {
    %c0_i32 = arith.constant 0 : i32
    %c0_i32_0 = arith.constant 0 : i32
    return %arg0, %c0_i32 : i32, i32
  }
}

</mosaic_0001>

<bundles_post_ra>
// kernel: conv2d_relu.1
= control target key start
LH: loop header
LB: loop body
LE: loop exit
PB: predicated region body
PF: predicated region fallthrough
CT: control target
= control target key end

     0   :  { %s4323_s12 = smov 0   ;;  %s4824_s0 = inlined_call_operand.vmem [shape: bf16[3072,512], index: 0, kind: input, shape index: {}]   ;;  %s4825_s1 = inlined_call_operand.vmem [shape: bf16[512,128], index: 1, kind: input, shape index: {}]   ;;  %s4826_s2 = inlined_call_operand.vmem [shape: f32[8,128], index: 2, kind: input, shape index: {}]   ;;  %s4827_s3 = inlined_call_operand.vmem [shape: bf16[3072,128], index: 3, kind: output, shape index: {}]  }
   0x1 LB: > { %s3057_s13 = sadd.s32 4294967295, %s4300_s12   ;;  %p3061_p0 = scmp.ge.s32.totalorder %s4300_s12, 1  ;;  %s4300_s12 = sphi %s4323_s12, %s13_s12  }
   0x2   : > { %p139_p1 = scmp.lt.s32.totalorder %s4300_s12, 5 }
   0x4   : > { %p140_p2 = pnand %p3061_p0, %p139_p1 }
   0x5   : > { %v3973_v0 = vld [vmem:[%s4825_s1] sm:$0xff] (!%p140_p2)   ;;  %v4302_v1 = vmov (!%p140_p2), 0   ;;  %v3975_v3 = vld [vmem:[%s4825_s1 + $0x8] sm:$0xff] (!%p140_p2)   ;;  %v3977_v5 = vld [vmem:[%s4825_s1 + $0x10] sm:$0xff] (!%p140_p2)   ;;  %s164_s7 = smul.u32 (!%p140_p2), 96, %s3057_s13 }
   0x6   : > { %143 = sbr.rel (%p140_p2) target bundleno = 669 (0x29d), region = 32  ;;  %1591 = vmatprep.subr.bf16.mxu1 (!%p140_p2), %v4302_v1  ;;  %2008 = vmatprep.subr.bf16.mxu0 (!%p140_p2), %v4302_v1  ;;  %v3974_v2 = vld [vmem:[%s4825_s1 + $0x80] sm:$0xff] (!%p140_p2)   ;;  %v3976_v4 = vld [vmem:[%s4825_s1 + $0x88] sm:$0xff] (!%p140_p2)   ;;  %v3978_v6 = vld [vmem:[%s4825_s1 + $0x90] sm:$0xff] (!%p140_p2)  }
   0x7   : > { %1592 = vmatpush1.bf16.msra.mxu1 (!%p140_p2), %v3973_v0  ;;  %2009 = vmatpush1.bf16.msra.mxu0 (!%p140_p2), %v3974_v2  ;;  %v3979_v7 = vld [vmem:[%s4825_s1 + $0x18] sm:$0xff] (!%p140_p2)   ;;  %v3981_v9 = vld [vmem:[%s4825_s1 + $0x20] sm:$0xff] (!%p140_p2)   ;;  %v3983_v11 = vld [vmem:[%s4825_s1 + $0x28] sm:$0xff] (!%p140_p2)   ;;  %p165_p3 = scmp.lt.s32.totalorder (!%p140_p2), %s164_s7, 383 }
   0x8   : > { %1593 = vmatprep.subr.bf16.mxu1 (!%p140_p2), %v4302_v1  ;;  %2010 = vmatprep.subr.bf16.mxu0 (!%p140_p2), %v4302_v1  ;;  %v3980_v8 = vld [vmem:[%s4825_s1 + $0x98] sm:$0xff] (!%p140_p2)   ;;  %v3982_v10 = vld [vmem:[%s4825_s1 + $0xa0] sm:$0xff] (!%p140_p2)   ;;  %v3984_v12 = vld [vmem:[%s4825_s1 + $0xa8] sm:$0xff] (!%p140_p2)  }
   0x9   : > { %v3985_v13 = vld [vmem:[%s4825_s1 + $0x30] sm:$0xff] (!%p140_p2)   ;;  %v3987_v15 = vld [vmem:[%s4825_s1 + $0x38] sm:$0xff] (!%p140_p2)   ;;  %v3989_v17 = vld [vmem:[%s4825_s1 + $0x40] sm:$0xff] (!%p140_p2)  }
   0xa   : > { %v3986_v14 = vld [vmem:[%s4825_s1 + $0xb0] sm:$0xff] (!%p140_p2)   ;;  %v3988_v16 = vld [vmem:[%s4825_s1 + $0xb8] sm:$0xff] (!%p140_p2)   ;;  %v3990_v18 = vld [vmem:[%s4825_s1 + $0xc0] sm:$0xff] (!%p140_p2)  }
   0xb   : > { %1594 = vmatpush1.bf16.msra.mxu1 (!%p140_p2), %v3975_v3  ;;  %2011 = vmatpush1.bf16.msra.mxu0 (!%p140_p2), %v3976_v4  ;;  %v3991_v20 = vld [vmem:[%s4825_s1 + $0x48] sm:$0xff] (!%p140_p2)   ;;  %v3993_v23 = vld [vmem:[%s4825_s1 + $0x50] sm:$0xff] (!%p140_p2)   ;;  %v3995_v25 = vld [vmem:[%s4825_s1 + $0x58] sm:$0xff] (!%p140_p2)  }
   0xc   : > { %1595 = vmatprep.subr.bf16.mxu1 (!%p140_p2), %v4302_v1  ;;  %2012 = vmatprep.subr.bf16.mxu0 (!%p140_p2), %v4302_v1  ;;  %v3992_v22 = vld [vmem:[%s4825_s1 + $0xc8] sm:$0xff] (!%p140_p2)   ;;  %v3994_v24 = vld [vmem:[%s4825_s1 + $0xd0] sm:$0xff] (!%p140_p2)   ;;  %v3996_v26 = vld [vmem:[%s4825_s1 + $0xd8] sm:$0xff] (!%p140_p2)  }
   0xd   : > { %s4829_s7 = smov (!%p165_p3, %s164_s7), 383  ;;  %v3997_v27 = vld [vmem:[%s4825_s1 + $0x60] sm:$0xff]   ;;  %v3999_v29 = vld [vmem:[%s4825_s1 + $0x68] sm:$0xff]   ;;  %v4001_v31 = vld [vmem:[%s4825_s1 + $0x70] sm:$0xff]  }
   0xe   : > { %s3388_s21 = sshll.u32 %s4829_s7, 4  ;;  %v3998_v28 = vld [vmem:[%s4825_s1 + $0xe0] sm:$0xff]   ;;  %v4000_v30 = vld [vmem:[%s4825_s1 + $0xe8] sm:$0xff]   ;;  %v4002_v32 = vld [vmem:[%s4825_s1 + $0xf0] sm:$0xff]   ;;  %s3064_s9 = sshll.u32 %s4829_s7, 2 }
   0xf   : > { %1596 = vmatpush1.bf16.msra.mxu1 %v3977_v5  ;;  %2013 = vmatpush1.bf16.msra.mxu0 %v3978_v6  ;;  %s4406_s26 = scalar_lea.vmem %s4824_s0, %s3388_s21  ;;  %v4003_v33 = vld [vmem:[%s4825_s1 + $0x78] sm:$0xff]   ;;  %s4594_s14 = scalar_lea.vmem %s4827_s3, %s3064_s9 }
  0x10   : > { %1597 = vmatprep.subr.bf16.mxu1 %v4302_v1  ;;  %2014 = vmatprep.subr.bf16.mxu0 %v4302_v1  ;;  %v4007_v19 = vld [vmem:[%s4406_s26 + $0x4] ss:$16 sps:$4 sm:$0xff]   ;;  %v4010_v21 = vld [vmem:[%s4406_s26 + $0xc] ss:$16 sps:$4 sm:$0xff]   ;;  %v4005_v35 = vld [vmem:[%s4406_s26] ss:$16 sps:$4 sm:$0xff]  }
  0x11   : > { %1623 = vmatprep.mubr.bf16.mxu1 %v4007_v19  ;;  %2040 = vmatprep.mubr.bf16.mxu0 %v4010_v21  ;;  %v4004_v34 = vld [vmem:[%s4825_s1 + $0xf8] sm:$0xff]   ;;  %v4011_v37 = vld [vmem:[%s4406_s26 + $0x24] ss:$16 sps:$4 sm:$0xff]   ;;  %v4015_v39 = vld [vmem:[%s4406_s26 + $0x20] ss:$16 sps:$4 sm:$0xff]  }
  0x12   : > { %v4008_v36 = vld [vmem:[%s4406_s26 + $0x8] ss:$16 sps:$4 sm:$0xff]   ;;  %v4013_v38 = vld [vmem:[%s4406_s26 + $0x2c] ss:$16 sps:$4 sm:$0xff]   ;;  %v4017_v41 = vld [vmem:[%s4406_s26 + $0x44] ss:$16 sps:$4 sm:$0xff]  }
  0x13   : > { %1598 = vmatpush1.bf16.msra.mxu1 %v3979_v7  ;;  %2015 = vmatpush1.bf16.msra.mxu0 %v3980_v8  ;;  %v4016_v40 = vld [vmem:[%s4406_s26 + $0x28] ss:$16 sps:$4 sm:$0xff]   ;;  %v4019_v42 = vld [vmem:[%s4406_s26 + $0x4c] ss:$16 sps:$4 sm:$0xff]   ;;  %v4021_v43 = vld [vmem:[%s4406_s26 + $0x40] ss:$16 sps:$4 sm:$0xff]  }
  0x14   : > { %1599 = vmatprep.subr.bf16.mxu1 %v4302_v1  ;;  %2016 = vmatprep.subr.bf16.mxu0 %v4302_v1  ;;  %v4022_v44 = vld [vmem:[%s4406_s26 + $0x48] ss:$16 sps:$4 sm:$0xff]   ;;  %v4023_v45 = vld [vmem:[%s4406_s26 + $0x64] ss:$16 sps:$4 sm:$0xff]   ;;  %v4025_v46 = vld [vmem:[%s4406_s26 + $0x6c] ss:$16 sps:$4 sm:$0xff]  }
  0x15   : > { %v4027_v47 = vld [vmem:[%s4406_s26 + $0x60] ss:$16 sps:$4 sm:$0xff]   ;;  %v4028_v48 = vld [vmem:[%s4406_s26 + $0x68] ss:$16 sps:$4 sm:$0xff]   ;;  %v4029_v49 = vld [vmem:[%s4406_s26 + $0x84] ss:$16 sps:$4 sm:$0xff]  }
  0x16   : > { %v4031_v50 = vld [vmem:[%s4406_s26 + $0x8c] ss:$16 sps:$4 sm:$0xff]   ;;  %v4033_v51 = vld [vmem:[%s4406_s26 + $0x80] ss:$16 sps:$4 sm:$0xff]   ;;  %v4034_v52 = vld [vmem:[%s4406_s26 + $0x88] ss:$16 sps:$4 sm:$0xff]  }
  0x17   : > { %1600 = vmatpush1.bf16.msra.mxu1 %v3981_v9  ;;  %2017 = vmatpush1.bf16.msra.mxu0 %v3982_v10  ;;  %v4035_v53 = vld [vmem:[%s4406_s26 + $0xa4] ss:$16 sps:$4 sm:$0xff]   ;;  %v4037_v54 = vld [vmem:[%s4406_s26 + $0xac] ss:$16 sps:$4 sm:$0xff]   ;;  %v4039_v55 = vld [vmem:[%s4406_s26 + $0xa0] ss:$16 sps:$4 sm:$0xff]  }
  0x18   : > { %1601 = vmatprep.subr.bf16.mxu1 %v4302_v1  ;;  %2018 = vmatprep.subr.bf16.mxu0 %v4302_v1  ;;  %v4040_v56 = vld [vmem:[%s4406_s26 + $0xa8] ss:$16 sps:$4 sm:$0xff]   ;;  %v4041_v57 = vld [vmem:[%s4406_s26 + $0xc4] ss:$16 sps:$4 sm:$0xff]   ;;  %v4043_v58 = vld [vmem:[%s4406_s26 + $0xcc] ss:$16 sps:$4 sm:$0xff]  }
  0x19   : > { %v4045_v59 = vld [vmem:[%s4406_s26 + $0xc0] ss:$16 sps:$4 sm:$0xff]   ;;  %v4046_v60 = vld [vmem:[%s4406_s26 + $0xc8] ss:$16 sps:$4 sm:$0xff]   ;;  %v4047_v61 = vld [vmem:[%s4406_s26 + $0xe4] ss:$16 sps:$4 sm:$0xff]  }
  0x1a   : > { %v4049_v62 = vld [vmem:[%s4406_s26 + $0xec] ss:$16 sps:$4 sm:$0xff]   ;;  %v4051_v63 = vld [vmem:[%s4406_s26 + $0xe0] ss:$16 sps:$4 sm:$0xff]   ;;  %v4052_v0 = vld [vmem:[%s4406_s26 + $0xe8] ss:$16 sps:$4 sm:$0xff]  }
  0x1b   : > { %1602 = vmatpush1.bf16.msra.mxu1 %v3983_v11  ;;  %2019 = vmatpush1.bf16.msra.mxu0 %v3984_v12  ;;  %v4055_v2 = vld [vmem:[%s4406_s26 + $0x10c] ss:$16 sps:$4 sm:$0xff]   ;;  %v4057_v3 = vld [vmem:[%s4406_s26 + $0x100] ss:$16 sps:$4 sm:$0xff]   ;;  %v4058_v4 = vld [vmem:[%s4406_s26 + $0x108] ss:$16 sps:$4 sm:$0xff]  }
  0x1c   : > { %1603 = vmatprep.subr.bf16.mxu1 %v4302_v1  ;;  %2020 = vmatprep.subr.bf16.mxu0 %v4302_v1  ;;  %v4059_v5 = vld [vmem:[%s4406_s26 + $0x124] ss:$16 sps:$4 sm:$0xff]   ;;  %v4061_v6 = vld [vmem:[%s4406_s26 + $0x12c] ss:$16 sps:$4 sm:$0xff]   ;;  %v4063_v7 = vld [vmem:[%s4406_s26 + $0x120] ss:$16 sps:$4 sm:$0xff]  }
  0x1d   : > { %v4064_v8 = vld [vmem:[%s4406_s26 + $0x128] ss:$16 sps:$4 sm:$0xff]   ;;  %v4065_v9 = vld [vmem:[%s4406_s26 + $0x144] ss:$16 sps:$4 sm:$0xff]   ;;  %v4067_v10 = vld [vmem:[%s4406_s26 + $0x14c] ss:$16 sps:$4 sm:$0xff]  }
  0x1e   : > { %v4069_v11 = vld [vmem:[%s4406_s26 + $0x140] ss:$16 sps:$4 sm:$0xff]   ;;  %v4070_v12 = vld [vmem:[%s4406_s26 + $0x148] ss:$16 sps:$4 sm:$0xff]   ;;  %v4083_v21 = vld [vmem:[%s4406_s26 + $0x1a4] ss:$16 sps:$4 sm:$0xff]  }
  0x1f   : > { %1604 = vmatpush1.bf16.msra.mxu1 %v3985_v13  ;;  %2021 = vmatpush1.bf16.msra.mxu0 %v3986_v14  ;;  %v4071_v13 = vld [vmem:[%s4406_s26 + $0x164] ss:$16 sps:$4 sm:$0xff]   ;;  %v4073_v14 = vld [vmem:[%s4406_s26 + $0x16c] ss:$16 sps:$4 sm:$0xff]   ;;  %v4081_v19 = vld [vmem:[%s4406_s26 + $0x180] ss:$16 sps:$4 sm:$0xff]  }
  0x20   : > { %1605 = vmatprep.subr.bf16.mxu1 %v4302_v1  ;;  %2022 = vmatprep.subr.bf16.mxu0 %v4302_v1 }
  0x23   : > { %1606 = vmatpush1.bf16.msra.mxu1 %v3987_v15  ;;  %2023 = vmatpush1.bf16.msra.mxu0 %v3988_v16  ;;  %v4075_v15 = vld [vmem:[%s4406_s26 + $0x160] ss:$16 sps:$4 sm:$0xff]   ;;  %v4076_v16 = vld [vmem:[%s4406_s26 + $0x168] ss:$16 sps:$4 sm:$0xff]  }
  0x24   : > { %1607 = vmatprep.subr.bf16.mxu1 %v4302_v1  ;;  %2024 = vmatprep.subr.bf16.mxu0 %v4302_v1 }
  0x27   : > { %1608 = vmatpush1.bf16.msra.mxu1 %v3989_v17  ;;  %2025 = vmatpush1.bf16.msra.mxu0 %v3990_v18  ;;  %v4077_v17 = vld [vmem:[%s4406_s26 + $0x184] ss:$16 sps:$4 sm:$0xff]   ;;  %v4079_v18 = vld [vmem:[%s4406_s26 + $0x18c] ss:$16 sps:$4 sm:$0xff]  }
  0x28   : > { %1609 = vmatprep.subr.bf16.mxu1 %v4302_v1  ;;  %2026 = vmatprep.subr.bf16.mxu0 %v4302_v1 }
  0x2b   : > { %1610 = vmatpush1.bf16.msra.mxu1 %v3991_v20  ;;  %2027 = vmatpush1.bf16.msra.mxu0 %v3992_v22  ;;  %v4082_v20 = vld [vmem:[%s4406_s26 + $0x188] ss:$16 sps:$4 sm:$0xff]   ;;  %v4085_v22 = vld [vmem:[%s4406_s26 + $0x1ac] ss:$16 sps:$4 sm:$0xff]  }
  0x2c   : > { %1611 = vmatprep.subr.bf16.mxu1 %v4302_v1  ;;  %2028 = vmatprep.subr.bf16.mxu0 %v4302_v1 }
  0x2f   : > { %1612 = vmatpush1.bf16.msra.mxu1 %v3993_v23  ;;  %2029 = vmatpush1.bf16.msra.mxu0 %v3994_v24  ;;  %v4087_v23 = vld [vmem:[%s4406_s26 + $0x1a0] ss:$16 sps:$4 sm:$0xff]   ;;  %v4088_v24 = vld [vmem:[%s4406_s26 + $0x1a8] ss:$16 sps:$4 sm:$0xff]  }
  0x30   : > { %1613 = vmatprep.subr.bf16.mxu1 %v4302_v1  ;;  %2030 = vmatprep.subr.bf16.mxu0 %v4302_v1 }
  0x33   : > { %1614 = vmatpush1.bf16.msra.mxu1 %v3995_v25  ;;  %2031 = vmatpush1.bf16.msra.mxu0 %v3996_v26  ;;  %v4089_v25 = vld [vmem:[%s4406_s26 + $0x1c4] ss:$16 sps:$4 sm:$0xff]   ;;  %v4091_v26 = vld [vmem:[%s4406_s26 + $0x1cc] ss:$16 sps:$4 sm:$0xff]  }
  0x34   : > { %1615 = vmatprep.subr.bf16.mxu1 %v4302_v1  ;;  %2032 = vmatprep.subr.bf16.mxu0 %v4302_v1 }
  0x37   : > { %1616 = vmatpush1.bf16.msra.mxu1 %v3997_v27  ;;  %2033 = vmatpush1.bf16.msra.mxu0 %v3998_v28  ;;  %v4093_v27 = vld [vmem:[%s4406_s26 + $0x1c0] ss:$16 sps:$4 sm:$0xff]   ;;  %v4094_v28 = vld [vmem:[%s4406_s26 + $0x1c8] ss:$16 sps:$4 sm:$0xff]  }
  0x38   : > { %1617 = vmatprep.subr.bf16.mxu1 %v4302_v1  ;;  %2034 = vmatprep.subr.bf16.mxu0 %v4302_v1 }
  0x3b   : > { %1618 = vmatpush1.bf16.msra.mxu1 %v3999_v29  ;;  %2035 = vmatpush1.bf16.msra.mxu0 %v4000_v30  ;;  %v4095_v29 = vld [vmem:[%s4406_s26 + $0x1e4] ss:$16 sps:$4 sm:$0xff]   ;;  %v4097_v30 = vld [vmem:[%s4406_s26 + $0x1ec] ss:$16 sps:$4 sm:$0xff]  }
  0x3c   : > { %1619 = vmatprep.subr.bf16.mxu1 %v4302_v1  ;;  %2036 = vmatprep.subr.bf16.mxu0 %v4302_v1 }
  0x3f   : > { %1620 = vmatpush1.bf16.msra.mxu1 %v4001_v31  ;;  %2037 = vmatpush1.bf16.msra.mxu0 %v4002_v32  ;;  %v4099_v31 = vld [vmem:[%s4406_s26 + $0x1e0] ss:$16 sps:$4 sm:$0xff]   ;;  %v4100_v32 = vld [vmem:[%s4406_s26 + $0x1e8] ss:$16 sps:$4 sm:$0xff]  }
  0x40   : > { %1621 = vmatprep.subr.bf16.mxu1 %v4302_v1  ;;  %2038 = vmatprep.subr.bf16.mxu0 %v4302_v1  ;;  %v4053_v1 = vld [vmem:[%s4406_s26 + $0x104] ss:$16 sps:$4 sm:$0xff]  }
  0x43   : > { %1622 = vmatpush1.bf16.msra.mxu1 %v4003_v33  ;;  %2039 = vmatpush1.bf16.msra.mxu0 %v4004_v34  ;;  %v4101_v33 = vld [vmem:[%s4406_s26 + $0x204] ss:$16 sps:$4 sm:$0xff]   ;;  %v4103_v34 = vld [vmem:[%s4406_s26 + $0x20c] ss:$16 sps:$4 sm:$0xff]  }
  0x46   : > { %1624 = vmatmul.mubr.bf16.vlgmr.msra.gmra.mrb[0].mxu1 %v4005_v35  ;;  %2041 = vmatmul.mubr.bf16.vlgmr.msra.gmra.mrb[0].mxu0 %v4008_v36  ;;  %v4105_v35 = vld [vmem:[%s4406_s26 + $0x200] ss:$16 sps:$4 sm:$0xff]   ;;  %v4106_v36 = vld [vmem:[%s4406_s26 + $0x208] ss:$16 sps:$4 sm:$0xff]  }
  0x47   : > { %1631 = vmatprep.mubr.bf16.mxu1 %v4011_v37  ;;  %2048 = vmatprep.mubr.bf16.mxu0 %v4013_v38  ;;  %v4107_v37 = vld [vmem:[%s4406_s26 + $0x224] ss:$16 sps:$4 sm:$0xff]   ;;  %v4109_v38 = vld [vmem:[%s4406_s26 + $0x22c] ss:$16 sps:$4 sm:$0xff]  }
  0x4e   : > { %1632 = vmatmul.mubr.bf16.gmra.mrb[4].mxu1 %v4015_v39  ;;  %2049 = vmatmul.mubr.bf16.gmra.mrb[4].mxu0 %v4016_v40  ;;  %v4111_v39 = vld [vmem:[%s4406_s26 + $0x220] ss:$16 sps:$4 sm:$0xff]   ;;  %v4112_v40 = vld [vmem:[%s4406_s26 + $0x228] ss:$16 sps:$4 sm:$0xff]  }
  0x4f   : > { %1639 = vmatprep.mubr.bf16.mxu1 %v4017_v41  ;;  %2056 = vmatprep.mubr.bf16.mxu0 %v4019_v42  ;;  %v4113_v41 = vld [vmem:[%s4406_s26 + $0x244] ss:$16 sps:$4 sm:$0xff]   ;;  %v4115_v42 = vld [vmem:[%s4406_s26 + $0x24c] ss:$16 sps:$4 sm:$0xff]  }
  0x56   : > { %1640 = vmatmul.mubr.bf16.gmra.mrb[8].mxu1 %v4021_v43  ;;  %2057 = vmatmul.mubr.bf16.gmra.mrb[8].mxu0 %v4022_v44  ;;  %v4117_v43 = vld [vmem:[%s4406_s26 + $0x240] ss:$16 sps:$4 sm:$0xff]   ;;  %v4118_v44 = vld [vmem:[%s4406_s26 + $0x248] ss:$16 sps:$4 sm:$0xff]  }
  0x57   : > { %1647 = vmatprep.mubr.bf16.mxu1 %v4023_v45  ;;  %2064 = vmatprep.mubr.bf16.mxu0 %v4025_v46  ;;  %v4119_v45 = vld [vmem:[%s4406_s26 + $0x264] ss:$16 sps:$4 sm:$0xff]   ;;  %v4121_v46 = vld [vmem:[%s4406_s26 + $0x26c] ss:$16 sps:$4 sm:$0xff]  }
  0x5e   : > { %1648 = vmatmul.mubr.bf16.gmra.mrb[12].mxu1 %v4027_v47  ;;  %2065 = vmatmul.mubr.bf16.gmra.mrb[12].mxu0 %v4028_v48  ;;  %v4123_v47 = vld [vmem:[%s4406_s26 + $0x260] ss:$16 sps:$4 sm:$0xff]   ;;  %v4124_v48 = vld [vmem:[%s4406_s26 + $0x268] ss:$16 sps:$4 sm:$0xff]  }
  0x5f   : > { %1655 = vmatprep.mubr.bf16.mxu1 %v4029_v49  ;;  %2072 = vmatprep.mubr.bf16.mxu0 %v4031_v50  ;;  %v4125_v49 = vld [vmem:[%s4406_s26 + $0x284] ss:$16 sps:$4 sm:$0xff]   ;;  %v4127_v50 = vld [vmem:[%s4406_s26 + $0x28c] ss:$16 sps:$4 sm:$0xff]  }
  0x66   : > { %1656 = vmatmul.mubr.bf16.gmra.mrb[16].mxu1 %v4033_v51  ;;  %2073 = vmatmul.mubr.bf16.gmra.mrb[16].mxu0 %v4034_v52  ;;  %v4129_v51 = vld [vmem:[%s4406_s26 + $0x280] ss:$16 sps:$4 sm:$0xff]   ;;  %v4130_v52 = vld [vmem:[%s4406_s26 + $0x288] ss:$16 sps:$4 sm:$0xff]  }
  0x67   : > { %1663 = vmatprep.mubr.bf16.mxu1 %v4035_v53  ;;  %2080 = vmatprep.mubr.bf16.mxu0 %v4037_v54  ;;  %v4131_v53 = vld [vmem:[%s4406_s26 + $0x2a4] ss:$16 sps:$4 sm:$0xff]   ;;  %v4133_v54 = vld [vmem:[%s4406_s26 + $0x2ac] ss:$16 sps:$4 sm:$0xff]  }
  0x6e   : > { %1664 = vmatmul.mubr.bf16.gmra.mrb[20].mxu1 %v4039_v55  ;;  %2081 = vmatmul.mubr.bf16.gmra.mrb[20].mxu0 %v4040_v56  ;;  %v4135_v55 = vld [vmem:[%s4406_s26 + $0x2a0] ss:$16 sps:$4 sm:$0xff]   ;;  %v4136_v56 = vld [vmem:[%s4406_s26 + $0x2a8] ss:$16 sps:$4 sm:$0xff]  }
  0x6f   : > { %1671 = vmatprep.mubr.bf16.mxu1 %v4041_v57  ;;  %2088 = vmatprep.mubr.bf16.mxu0 %v4043_v58  ;;  %v4137_v57 = vld [vmem:[%s4406_s26 + $0x2c4] ss:$16 sps:$4 sm:$0xff]   ;;  %v4139_v58 = vld [vmem:[%s4406_s26 + $0x2cc] ss:$16 sps:$4 sm:$0xff]  }
  0x76   : > { %1672 = vmatmul.mubr.bf16.gmra.mrb[24].mxu1 %v4045_v59  ;;  %2089 = vmatmul.mubr.bf16.gmra.mrb[24].mxu0 %v4046_v60  ;;  %v4141_v59 = vld [vmem:[%s4406_s26 + $0x2c0] ss:$16 sps:$4 sm:$0xff]   ;;  %v4142_v60 = vld [vmem:[%s4406_s26 + $0x2c8] ss:$16 sps:$4 sm:$0xff]  }
  0x77   : > { %1679 = vmatprep.mubr.bf16.mxu1 %v4047_v61  ;;  %2096 = vmatprep.mubr.bf16.mxu0 %v4049_v62  ;;  %v4143_v61 = vld [vmem:[%s4406_s26 + $0x2e4] ss:$16 sps:$4 sm:$0xff]   ;;  %v4145_v62 = vld [vmem:[%s4406_s26 + $0x2ec] ss:$16 sps:$4 sm:$0xff]  }
  0x7e   : > { %1680 = vmatmul.mubr.bf16.gmra.mrb[28].mxu1 %v4051_v63  ;;  %2097 = vmatmul.mubr.bf16.gmra.mrb[28].mxu0 %v4052_v0  ;;  %v4147_v63 = vld [vmem:[%s4406_s26 + $0x2e0] ss:$16 sps:$4 sm:$0xff]   ;;  %v4148_v0 = vld [vmem:[%s4406_s26 + $0x2e8] ss:$16 sps:$4 sm:$0xff]  }
  0x7f   : > { %1687 = vmatprep.mubr.bf16.mxu1 %v4053_v1  ;;  %2104 = vmatprep.mubr.bf16.mxu0 %v4055_v2  ;;  %v4149_v1 = vld [vmem:[%s4406_s26 + $0x304] ss:$16 sps:$4 sm:$0xff]   ;;  %v4151_v2 = vld [vmem:[%s4406_s26 + $0x30c] ss:$16 sps:$4 sm:$0xff]  }
  0x86   : > { %1688 = vmatmul.mubr.bf16.gmra.mrb[32].mxu1 %v4057_v3  ;;  %2105 = vmatmul.mubr.bf16.gmra.mrb[32].mxu0 %v4058_v4  ;;  %v4153_v3 = vld [vmem:[%s4406_s26 + $0x300] ss:$16 sps:$4 sm:$0xff]   ;;  %v4154_v4 = vld [vmem:[%s4406_s26 + $0x308] ss:$16 sps:$4 sm:$0xff]  }
  0x87   : > { %1695 = vmatprep.mubr.bf16.mxu1 %v4059_v5  ;;  %2112 = vmatprep.mubr.bf16.mxu0 %v4061_v6  ;;  %v4155_v5 = vld [vmem:[%s4406_s26 + $0x324] ss:$16 sps:$4 sm:$0xff]   ;;  %v4157_v6 = vld [vmem:[%s4406_s26 + $0x32c] ss:$16 sps:$4 sm:$0xff]  }
  0x8e   : > { %1696 = vmatmul.mubr.bf16.gmra.mrb[36].mxu1 %v4063_v7  ;;  %2113 = vmatmul.mubr.bf16.gmra.mrb[36].mxu0 %v4064_v8  ;;  %v4159_v7 = vld [vmem:[%s4406_s26 + $0x320] ss:$16 sps:$4 sm:$0xff]   ;;  %v4160_v8 = vld [vmem:[%s4406_s26 + $0x328] ss:$16 sps:$4 sm:$0xff]  }
  0x8f   : > { %1703 = vmatprep.mubr.bf16.mxu1 %v4065_v9  ;;  %2120 = vmatprep.mubr.bf16.mxu0 %v4067_v10  ;;  %v4161_v9 = vld [vmem:[%s4406_s26 + $0x344] ss:$16 sps:$4 sm:$0xff]   ;;  %v4163_v10 = vld [vmem:[%s4406_s26 + $0x34c] ss:$16 sps:$4 sm:$0xff]  }
  0x96   : > { %1704 = vmatmul.mubr.bf16.gmra.mrb[40].mxu1 %v4069_v11  ;;  %2121 = vmatmul.mubr.bf16.gmra.mrb[40].mxu0 %v4070_v12  ;;  %v4165_v11 = vld [vmem:[%s4406_s26 + $0x340] ss:$16 sps:$4 sm:$0xff]   ;;  %v4166_v12 = vld [vmem:[%s4406_s26 + $0x348] ss:$16 sps:$4 sm:$0xff]  }
  0x97   : > { %1711 = vmatprep.mubr.bf16.mxu1 %v4071_v13  ;;  %2128 = vmatprep.mubr.bf16.mxu0 %v4073_v14  ;;  %v4167_v13 = vld [vmem:[%s4406_s26 + $0x364] ss:$16 sps:$4 sm:$0xff]   ;;  %v4169_v14 = vld [vmem:[%s4406_s26 + $0x36c] ss:$16 sps:$4 sm:$0xff]  }
  0x9e   : > { %1712 = vmatmul.mubr.bf16.gmra.mrb[44].mxu1 %v4075_v15  ;;  %2129 = vmatmul.mubr.bf16.gmra.mrb[44].mxu0 %v4076_v16  ;;  %v4582_v15 = vld [vmem:[%s4826_s2] ss:$0 sm:$0xff] }
  0x9f   : > { %1719 = vmatprep.mubr.bf16.mxu1 %v4077_v17  ;;  %2136 = vmatprep.mubr.bf16.mxu0 %v4079_v18 }
  0xa6   : > { %1720 = vmatmul.mubr.bf16.gmra.mrb[48].mxu1 %v4081_v19  ;;  %2137 = vmatmul.mubr.bf16.gmra.mrb[48].mxu0 %v4082_v20  ;;  %v4171_v20 = vld [vmem:[%s4406_s26 + $0x360] ss:$16 sps:$4 sm:$0xff]  }
  0xa7   : > { %1727 = vmatprep.mubr.bf16.mxu1 %v4083_v21  ;;  %2144 = vmatprep.mubr.bf16.mxu0 %v4085_v22 }
  0xae   : > { %1728 = vmatmul.mubr.bf16.gmra.mrb[52].mxu1 %v4087_v23  ;;  %2145 = vmatmul.mubr.bf16.gmra.mrb[52].mxu0 %v4088_v24  ;;  %v4172_v23 = vld [vmem:[%s4406_s26 + $0x368] ss:$16 sps:$4 sm:$0xff]   ;;  %v4173_v24 = vld [vmem:[%s4406_s26 + $0x384] ss:$16 sps:$4 sm:$0xff]  }
  0xaf   : > { %1735 = vmatprep.mubr.bf16.mxu1 %v4089_v25  ;;  %2152 = vmatprep.mubr.bf16.mxu0 %v4091_v26 }
  0xb6   : > { %1736 = vmatmul.mubr.bf16.gmra.mrb[56].mxu1 %v4093_v27  ;;  %2153 = vmatmul.mubr.bf16.gmra.mrb[56].mxu0 %v4094_v28 }
  0xb7   : > { %1743 = vmatprep.mubr.bf16.mxu1 %v4095_v29  ;;  %2160 = vmatprep.mubr.bf16.mxu0 %v4097_v30  ;;  %v4175_v29 = vld [vmem:[%s4406_s26 + $0x38c] ss:$16 sps:$4 sm:$0xff]  }
  0xbe   : > { %1744 = vmatmul.mubr.bf16.gmra.mrb[60].mxu1 %v4099_v31  ;;  %2161 = vmatmul.mubr.bf16.gmra.mrb[60].mxu0 %v4100_v32 }
  0xbf   : > { %1751 = vmatprep.mubr.bf16.mxu1 %v4101_v33  ;;  %2168 = vmatprep.mubr.bf16.mxu0 %v4103_v34 }
  0xc6   : > { %1752 = vmatmul.mubr.bf16.gmra.mrb[64].mxu1 %v4105_v35  ;;  %2169 = vmatmul.mubr.bf16.gmra.mrb[64].mxu0 %v4106_v36 }
  0xc7   : > { %1759 = vmatprep.mubr.bf16.mxu1 %v4107_v37  ;;  %2176 = vmatprep.mubr.bf16.mxu0 %v4109_v38 }
  0xce   : > { %1760 = vmatmul.mubr.bf16.gmra.mrb[68].mxu1 %v4111_v39  ;;  %2177 = vmatmul.mubr.bf16.gmra.mrb[68].mxu0 %v4112_v40  ;;  %v4177_v39 = vld [vmem:[%s4406_s26 + $0x380] ss:$16 sps:$4 sm:$0xff]  }
  0xcf   : > { %1767 = vmatprep.mubr.bf16.mxu1 %v4113_v41  ;;  %2184 = vmatprep.mubr.bf16.mxu0 %v4115_v42  ;;  %v4178_v42 = vld [vmem:[%s4406_s26 + $0x388] ss:$16 sps:$4 sm:$0xff]  }
  0xd6   : > { %1768 = vmatmul.mubr.bf16.gmra.mrb[72].mxu1 %v4117_v43  ;;  %2185 = vmatmul.mubr.bf16.gmra.mrb[72].mxu0 %v4118_v44  ;;  %v4179_v43 = vld [vmem:[%s4406_s26 + $0x3a4] ss:$16 sps:$4 sm:$0xff]  }
  0xd7   : > { %1775 = vmatprep.mubr.bf16.mxu1 %v4119_v45  ;;  %2192 = vmatprep.mubr.bf16.mxu0 %v4121_v46 }
  0xde   : > { %1776 = vmatmul.mubr.bf16.gmra.mrb[76].mxu1 %v4123_v47  ;;  %2193 = vmatmul.mubr.bf16.gmra.mrb[76].mxu0 %v4124_v48  ;;  %v4181_v48 = vld [vmem:[%s4406_s26 + $0x3ac] ss:$16 sps:$4 sm:$0xff]  }
  0xdf   : > { %1783 = vmatprep.mubr.bf16.mxu1 %v4125_v49  ;;  %2200 = vmatprep.mubr.bf16.mxu0 %v4127_v50 }
  0xe6   : > { %1784 = vmatmul.mubr.bf16.gmra.mrb[80].mxu1 %v4129_v51  ;;  %2201 = vmatmul.mubr.bf16.gmra.mrb[80].mxu0 %v4130_v52 }
  0xe7   : > { %1791 = vmatprep.mubr.bf16.mxu1 %v4131_v53  ;;  %2208 = vmatprep.mubr.bf16.mxu0 %v4133_v54 }
  0xee   : > { %1792 = vmatmul.mubr.bf16.gmra.mrb[84].mxu1 %v4135_v55  ;;  %2209 = vmatmul.mubr.bf16.gmra.mrb[84].mxu0 %v4136_v56 }
  0xef   : > { %1799 = vmatprep.mubr.bf16.mxu1 %v4137_v57  ;;  %2216 = vmatprep.mubr.bf16.mxu0 %v4139_v58  ;;  %v4183_v58 = vld [vmem:[%s4406_s26 + $0x3a0] ss:$16 sps:$4 sm:$0xff]  }
  0xf6   : > { %1800 = vmatmul.mubr.bf16.gmra.mrb[88].mxu1 %v4141_v59  ;;  %2217 = vmatmul.mubr.bf16.gmra.mrb[88].mxu0 %v4142_v60 }
  0xf7   : > { %1807 = vmatprep.mubr.bf16.mxu1 %v4143_v61  ;;  %2224 = vmatprep.mubr.bf16.mxu0 %v4145_v62  ;;  %v4184_v61 = vld [vmem:[%s4406_s26 + $0x3a8] ss:$16 sps:$4 sm:$0xff]   ;;  %v4185_v62 = vld [vmem:[%s4406_s26 + $0x3c4] ss:$16 sps:$4 sm:$0xff]  }
  0xfe   : > { %1808 = vmatmul.mubr.bf16.gmra.mrb[92].mxu1 %v4147_v63  ;;  %2225 = vmatmul.mubr.bf16.gmra.mrb[92].mxu0 %v4148_v0 }
  0xff   : > { %1815 = vmatprep.mubr.bf16.mxu1 %v4149_v1  ;;  %2232 = vmatprep.mubr.bf16.mxu0 %v4151_v2 }
 0x106   : > { %1816 = vmatmul.mubr.bf16.gmra.mrb[96].mxu1 %v4153_v3  ;;  %2233 = vmatmul.mubr.bf16.gmra.mrb[96].mxu0 %v4154_v4  ;;  %v4187_v3 = vld [vmem:[%s4406_s26 + $0x3cc] ss:$16 sps:$4 sm:$0xff]  }
 0x107   : > { %1823 = vmatprep.mubr.bf16.mxu1 %v4155_v5  ;;  %2240 = vmatprep.mubr.bf16.mxu0 %v4157_v6 }
 0x10e   : > { %1824 = vmatmul.mubr.bf16.gmra.mrb[100].mxu1 %v4159_v7  ;;  %2241 = vmatmul.mubr.bf16.gmra.mrb[100].mxu0 %v4160_v8 }
 0x10f   : > { %1831 = vmatprep.mubr.bf16.mxu1 %v4161_v9  ;;  %2248 = vmatprep.mubr.bf16.mxu0 %v4163_v10 }
 0x116   : > { %1832 = vmatmul.mubr.bf16.gmra.mrb[104].mxu1 %v4165_v11  ;;  %2249 = vmatmul.mubr.bf16.gmra.mrb[104].mxu0 %v4166_v12 }
 0x117   : > { %1839 = vmatprep.mubr.bf16.mxu1 %v4167_v13  ;;  %2256 = vmatprep.mubr.bf16.mxu0 %v4169_v14  ;;  %v4189_v13 = vld [vmem:[%s4406_s26 + $0x3c0] ss:$16 sps:$4 sm:$0xff]  }
 0x119   : > { %v1625_v16 = vpop.f32.mrb[0].mxu1  ;;  %v2042_v18 = vpop.f32.mrb[0].mxu0 }
 0x11a   : > { %v1626_v17 = vadd.f32 %v4582_v15, %v1625_v16  ;;  %v1627_v19 = vpop.f32.mrb[1].mxu1  ;;  %v2044_v21 = vpop.f32.mrb[1].mxu0 }
 0x11b   : > { %v1628_v22 = vpop.f32.mrb[2].mxu1  ;;  %v2045_v27 = vpop.f32.mrb[2].mxu0 }
 0x11c   : > { %v2043_v25 = vadd.f32 %v2042_v18, %v1626_v17  ;;  %v1629_v26 = vadd.f32 %v4582_v15, %v1628_v22  ;;  %v1630_v28 = vpop.f32.mrb[3].mxu1  ;;  %v2047_v30 = vpop.f32.mrb[3].mxu0  ;;  %v4190_v17 = vld [vmem:[%s4406_s26 + $0x3c8] ss:$16 sps:$4 sm:$0xff]   ;;  %v4191_v18 = vld [vmem:[%s4406_s26 + $0x3e4] ss:$16 sps:$4 sm:$0xff]  }
 0x11e   : > { %v2046_v31 = vadd.f32 %v2045_v27, %v1629_v26  ;;  %1840 = vmatmul.mubr.bf16.gmra.mrb[108].mxu1 %v4171_v20  ;;  %2257 = vmatmul.mubr.bf16.gmra.mrb[108].mxu0 %v4172_v23  ;;  %v2425_v32 = vmax.f32 %v2043_v25, 0.0  ;;  %v4193_v23 = vld [vmem:[%s4406_s26 + $0x3ec] ss:$16 sps:$4 sm:$0xff]  }
 0x11f   : > { %1847 = vmatprep.mubr.bf16.mxu1 %v4173_v24  ;;  %2264 = vmatprep.mubr.bf16.mxu0 %v4175_v29 }
 0x120   : > { %v2426_v33 = vmax.f32 %v2046_v31, 0.0 }
 0x121   : > { %v1633_v34 = vpop.f32.mrb[4].mxu1  ;;  %v2050_v37 = vpop.f32.mrb[4].mxu0 }
 0x122   : > { %v3488_v35 = vpack.c.bf16 %v2426_v33, %v2425_v32  ;;  %v1634_v36 = vadd.f32 %v4582_v15, %v1633_v34  ;;  %v1635_v38 = vpop.f32.mrb[5].mxu1  ;;  %v2052_v40 = vpop.f32.mrb[5].mxu0  ;;  %v4195_v33 = vld [vmem:[%s4406_s26 + $0x3e0] ss:$16 sps:$4 sm:$0xff]  }
 0x123   : > { %v1636_v41 = vpop.f32.mrb[6].mxu1  ;;  %v2053_v46 = vpop.f32.mrb[6].mxu0 }
 0x124   : > { %3489 = vst [vmem:[%s4594_s14] sm:$0xff] %v3488_v35   ;;  %v2051_v44 = vadd.f32 %v2050_v37, %v1634_v36  ;;  %v1637_v45 = vadd.f32 %v4582_v15, %v1636_v41  ;;  %v1638_v47 = vpop.f32.mrb[7].mxu1  ;;  %v2055_v49 = vpop.f32.mrb[7].mxu0  ;;  %v4196_v36 = vld [vmem:[%s4406_s26 + $0x3e8] ss:$16 sps:$4 sm:$0xff]   ;;  %v4197_v37 = vld [vmem:[%s4406_s26 + $0x404] ss:$16 sps:$4 sm:$0xff]  }
 0x126   : > { %v2054_v50 = vadd.f32 %v2053_v46, %v1637_v45  ;;  %1848 = vmatmul.mubr.bf16.gmra.mrb[112].mxu1 %v4177_v39  ;;  %2265 = vmatmul.mubr.bf16.gmra.mrb[112].mxu0 %v4178_v42  ;;  %v2427_v51 = vmax.f32 %v2051_v44, 0.0  ;;  %v4199_v42 = vld [vmem:[%s4406_s26 + $0x40c] ss:$16 sps:$4 sm:$0xff]  }
 0x127   : > { %1855 = vmatprep.mubr.bf16.mxu1 %v4179_v43  ;;  %2272 = vmatprep.mubr.bf16.mxu0 %v4181_v48 }
 0x128   : > { %v2428_v52 = vmax.f32 %v2054_v50, 0.0 }
 0x129   : > { %v1641_v53 = vpop.f32.mrb[8].mxu1  ;;  %v2058_v56 = vpop.f32.mrb[8].mxu0 }
 0x12a   : > { %v3493_v54 = vpack.c.bf16 %v2428_v52, %v2427_v51  ;;  %v1642_v55 = vadd.f32 %v4582_v15, %v1641_v53  ;;  %v1643_v57 = vpop.f32.mrb[9].mxu1  ;;  %v2060_v59 = vpop.f32.mrb[9].mxu0  ;;  %v4201_v52 = vld [vmem:[%s4406_s26 + $0x400] ss:$16 sps:$4 sm:$0xff]  }
 0x12b   : > { %v1644_v60 = vpop.f32.mrb[10].mxu1  ;;  %v2061_v1 = vpop.f32.mrb[10].mxu0 }
 0x12c   : > { %3725 = vst [vmem:[%s4594_s14 + $0x8] sm:$0xff] %v3493_v54   ;;  %v2059_v63 = vadd.f32 %v2058_v56, %v1642_v55  ;;  %v1645_v0 = vadd.f32 %v4582_v15, %v1644_v60  ;;  %v1646_v2 = vpop.f32.mrb[11].mxu1  ;;  %v2063_v4 = vpop.f32.mrb[11].mxu0  ;;  %v4202_v55 = vld [vmem:[%s4406_s26 + $0x408] ss:$16 sps:$4 sm:$0xff]  }
 0x12d   : > { %v4203_v56 = vld [vmem:[%s4406_s26 + $0x424] ss:$16 sps:$4 sm:$0xff]  }
 0x12e   : > { %v2062_v5 = vadd.f32 %v2061_v1, %v1645_v0  ;;  %1856 = vmatmul.mubr.bf16.gmra.mrb[116].mxu1 %v4183_v58  ;;  %2273 = vmatmul.mubr.bf16.gmra.mrb[116].mxu0 %v4184_v61  ;;  %v2429_v6 = vmax.f32 %v2059_v63, 0.0  ;;  %v4205_v61 = vld [vmem:[%s4406_s26 + $0x42c] ss:$16 sps:$4 sm:$0xff]  }
 0x12f   : > { %1863 = vmatprep.mubr.bf16.mxu1 %v4185_v62  ;;  %2280 = vmatprep.mubr.bf16.mxu0 %v4187_v3 }
 0x130   : > { %v2430_v7 = vmax.f32 %v2062_v5, 0.0 }
 0x131   : > { %v1649_v8 = vpop.f32.mrb[12].mxu1  ;;  %v2066_v11 = vpop.f32.mrb[12].mxu0 }
 0x132   : > { %v3498_v9 = vpack.c.bf16 %v2430_v7, %v2429_v6  ;;  %v1650_v10 = vadd.f32 %v4582_v15, %v1649_v8  ;;  %v1651_v12 = vpop.f32.mrb[13].mxu1  ;;  %v2068_v14 = vpop.f32.mrb[13].mxu0  ;;  %v4207_v7 = vld [vmem:[%s4406_s26 + $0x420] ss:$16 sps:$4 sm:$0xff]  }
 0x133   : > { %v1652_v16 = vpop.f32.mrb[14].mxu1  ;;  %v2069_v21 = vpop.f32.mrb[14].mxu0 }
 0x134   : > { %3726 = vst [vmem:[%s4594_s14 + $0x10] sm:$0xff] %v3498_v9   ;;  %v2067_v19 = vadd.f32 %v2066_v11, %v1650_v10  ;;  %v1653_v20 = vadd.f32 %v4582_v15, %v1652_v16  ;;  %v1654_v22 = vpop.f32.mrb[15].mxu1  ;;  %v2071_v24 = vpop.f32.mrb[15].mxu0  ;;  %v4208_v10 = vld [vmem:[%s4406_s26 + $0x428] ss:$16 sps:$4 sm:$0xff]  }
 0x135   : > { %v4209_v11 = vld [vmem:[%s4406_s26 + $0x444] ss:$16 sps:$4 sm:$0xff]  }
 0x136   : > { %v2070_v25 = vadd.f32 %v2069_v21, %v1653_v20  ;;  %1864 = vmatmul.mubr.bf16.gmra.mrb[120].mxu1 %v4189_v13  ;;  %2281 = vmatmul.mubr.bf16.gmra.mrb[120].mxu0 %v4190_v17  ;;  %v2431_v26 = vmax.f32 %v2067_v19, 0.0  ;;  %v4211_v17 = vld [vmem:[%s4406_s26 + $0x44c] ss:$16 sps:$4 sm:$0xff]  }
 0x137   : > { %1871 = vmatprep.mubr.bf16.mxu1 %v4191_v18  ;;  %2288 = vmatprep.mubr.bf16.mxu0 %v4193_v23 }
 0x138   : > { %v2432_v27 = vmax.f32 %v2070_v25, 0.0 }
 0x139   : > { %v1657_v28 = vpop.f32.mrb[16].mxu1  ;;  %v2074_v31 = vpop.f32.mrb[16].mxu0 }
 0x13a   : > { %v3503_v29 = vpack.c.bf16 %v2432_v27, %v2431_v26  ;;  %v1658_v30 = vadd.f32 %v4582_v15, %v1657_v28  ;;  %v1659_v32 = vpop.f32.mrb[17].mxu1  ;;  %v2076_v34 = vpop.f32.mrb[17].mxu0  ;;  %v4213_v27 = vld [vmem:[%s4406_s26 + $0x440] ss:$16 sps:$4 sm:$0xff]  }
 0x13b   : > { %v1660_v35 = vpop.f32.mrb[18].mxu1  ;;  %v2077_v40 = vpop.f32.mrb[18].mxu0 }
 0x13c   : > { %3727 = vst [vmem:[%s4594_s14 + $0x18] sm:$0xff] %v3503_v29   ;;  %v2075_v38 = vadd.f32 %v2074_v31, %v1658_v30  ;;  %v1661_v39 = vadd.f32 %v4582_v15, %v1660_v35  ;;  %v1662_v41 = vpop.f32.mrb[19].mxu1  ;;  %v2079_v43 = vpop.f32.mrb[19].mxu0  ;;  %v4214_v30 = vld [vmem:[%s4406_s26 + $0x448] ss:$16 sps:$4 sm:$0xff]  }
 0x13d   : > { %v4215_v31 = vld [vmem:[%s4406_s26 + $0x464] ss:$16 sps:$4 sm:$0xff]  }
 0x13e   : > { %v2078_v44 = vadd.f32 %v2077_v40, %v1661_v39  ;;  %1872 = vmatmul.mubr.bf16.gmra.mrb[124].mxu1 %v4195_v33  ;;  %2289 = vmatmul.mubr.bf16.gmra.mrb[124].mxu0 %v4196_v36  ;;  %v2433_v45 = vmax.f32 %v2075_v38, 0.0  ;;  %v4217_v36 = vld [vmem:[%s4406_s26 + $0x46c] ss:$16 sps:$4 sm:$0xff]  }
 0x13f   : > { %1879 = vmatprep.mubr.bf16.mxu1 %v4197_v37  ;;  %2296 = vmatprep.mubr.bf16.mxu0 %v4199_v42 }
 0x140   : > { %v2434_v46 = vmax.f32 %v2078_v44, 0.0 }
 0x141   : > { %v1665_v47 = vpop.f32.mrb[20].mxu1  ;;  %v2082_v50 = vpop.f32.mrb[20].mxu0 }
 0x142   : > { %v3508_v48 = vpack.c.bf16 %v2434_v46, %v2433_v45  ;;  %v1666_v49 = vadd.f32 %v4582_v15, %v1665_v47  ;;  %v1667_v51 = vpop.f32.mrb[21].mxu1  ;;  %v2084_v53 = vpop.f32.mrb[21].mxu0  ;;  %v4219_v46 = vld [vmem:[%s4406_s26 + $0x460] ss:$16 sps:$4 sm:$0xff]  }
 0x143   : > { %v1668_v54 = vpop.f32.mrb[22].mxu1  ;;  %v2085_v59 = vpop.f32.mrb[22].mxu0 }
 0x144   : > { %3728 = vst [vmem:[%s4594_s14 + $0x20] sm:$0xff] %v3508_v48   ;;  %v2083_v57 = vadd.f32 %v2082_v50, %v1666_v49  ;;  %v1669_v58 = vadd.f32 %v4582_v15, %v1668_v54  ;;  %v1670_v60 = vpop.f32.mrb[23].mxu1  ;;  %v2087_v62 = vpop.f32.mrb[23].mxu0  ;;  %v4220_v49 = vld [vmem:[%s4406_s26 + $0x468] ss:$16 sps:$4 sm:$0xff]  }
 0x145   : > { %v4221_v50 = vld [vmem:[%s4406_s26 + $0x484] ss:$16 sps:$4 sm:$0xff]  }
 0x146   : > { %v2086_v63 = vadd.f32 %v2085_v59, %v1669_v58  ;;  %1880 = vmatmul.mubr.bf16.gmra.mrb[128].mxu1 %v4201_v52  ;;  %2297 = vmatmul.mubr.bf16.gmra.mrb[128].mxu0 %v4202_v55  ;;  %v2435_v0 = vmax.f32 %v2083_v57, 0.0  ;;  %v4223_v55 = vld [vmem:[%s4406_s26 + $0x48c] ss:$16 sps:$4 sm:$0xff]  }
 0x147   : > { %1887 = vmatprep.mubr.bf16.mxu1 %v4203_v56  ;;  %2304 = vmatprep.mubr.bf16.mxu0 %v4205_v61 }
 0x148   : > { %v2436_v1 = vmax.f32 %v2086_v63, 0.0 }
 0x149   : > { %v1673_v2 = vpop.f32.mrb[24].mxu1  ;;  %v2090_v5 = vpop.f32.mrb[24].mxu0 }
 0x14a   : > { %v3513_v3 = vpack.c.bf16 %v2436_v1, %v2435_v0  ;;  %v1674_v4 = vadd.f32 %v4582_v15, %v1673_v2  ;;  %v1675_v6 = vpop.f32.mrb[25].mxu1  ;;  %v2092_v8 = vpop.f32.mrb[25].mxu0  ;;  %v4225_v1 = vld [vmem:[%s4406_s26 + $0x480] ss:$16 sps:$4 sm:$0xff]  }
 0x14b   : > { %v1676_v9 = vpop.f32.mrb[26].mxu1  ;;  %v2093_v14 = vpop.f32.mrb[26].mxu0 }
 0x14c   : > { %3729 = vst [vmem:[%s4594_s14 + $0x28] sm:$0xff] %v3513_v3   ;;  %v2091_v12 = vadd.f32 %v2090_v5, %v1674_v4  ;;  %v1677_v13 = vadd.f32 %v4582_v15, %v1676_v9  ;;  %v1678_v16 = vpop.f32.mrb[27].mxu1  ;;  %v2095_v18 = vpop.f32.mrb[27].mxu0  ;;  %v4226_v4 = vld [vmem:[%s4406_s26 + $0x488] ss:$16 sps:$4 sm:$0xff]  }
 0x14d   : > { %v4227_v5 = vld [vmem:[%s4406_s26 + $0x4a4] ss:$16 sps:$4 sm:$0xff]  }
 0x14e   : > { %v2094_v19 = vadd.f32 %v2093_v14, %v1677_v13  ;;  %1888 = vmatmul.mubr.bf16.gmra.mrb[132].mxu1 %v4207_v7  ;;  %2305 = vmatmul.mubr.bf16.gmra.mrb[132].mxu0 %v4208_v10  ;;  %v2437_v20 = vmax.f32 %v2091_v12, 0.0  ;;  %v4229_v10 = vld [vmem:[%s4406_s26 + $0x4ac] ss:$16 sps:$4 sm:$0xff]  }
 0x14f   : > { %1895 = vmatprep.mubr.bf16.mxu1 %v4209_v11  ;;  %2312 = vmatprep.mubr.bf16.mxu0 %v4211_v17 }
 0x150   : > { %v2438_v21 = vmax.f32 %v2094_v19, 0.0 }
 0x151   : > { %v1681_v22 = vpop.f32.mrb[28].mxu1  ;;  %v2098_v25 = vpop.f32.mrb[28].mxu0 }
 0x152   : > { %v3518_v23 = vpack.c.bf16 %v2438_v21, %v2437_v20  ;;  %v1682_v24 = vadd.f32 %v4582_v15, %v1681_v22  ;;  %v1683_v26 = vpop.f32.mrb[29].mxu1  ;;  %v2100_v28 = vpop.f32.mrb[29].mxu0  ;;  %v4231_v21 = vld [vmem:[%s4406_s26 + $0x4a0] ss:$16 sps:$4 sm:$0xff]  }
 0x153   : > { %v1684_v29 = vpop.f32.mrb[30].mxu1  ;;  %v2101_v34 = vpop.f32.mrb[30].mxu0 }
 0x154   : > { %3730 = vst [vmem:[%s4594_s14 + $0x30] sm:$0xff] %v3518_v23   ;;  %v2099_v32 = vadd.f32 %v2098_v25, %v1682_v24  ;;  %v1685_v33 = vadd.f32 %v4582_v15, %v1684_v29  ;;  %v1686_v35 = vpop.f32.mrb[31].mxu1  ;;  %v2103_v37 = vpop.f32.mrb[31].mxu0  ;;  %v4232_v24 = vld [vmem:[%s4406_s26 + $0x4a8] ss:$16 sps:$4 sm:$0xff]  }
 0x155   : > { %v4233_v25 = vld [vmem:[%s4406_s26 + $0x4c4] ss:$16 sps:$4 sm:$0xff]  }
 0x156   : > { %v2102_v38 = vadd.f32 %v2101_v34, %v1685_v33  ;;  %1896 = vmatmul.mubr.bf16.gmra.mrb[136].mxu1 %v4213_v27  ;;  %2313 = vmatmul.mubr.bf16.gmra.mrb[136].mxu0 %v4214_v30  ;;  %v2439_v39 = vmax.f32 %v2099_v32, 0.0  ;;  %v4235_v30 = vld [vmem:[%s4406_s26 + $0x4cc] ss:$16 sps:$4 sm:$0xff]  }
 0x157   : > { %1903 = vmatprep.mubr.bf16.mxu1 %v4215_v31  ;;  %2320 = vmatprep.mubr.bf16.mxu0 %v4217_v36 }
 0x158   : > { %v2440_v40 = vmax.f32 %v2102_v38, 0.0 }
 0x159   : > { %v1689_v41 = vpop.f32.mrb[32].mxu1  ;;  %v2106_v44 = vpop.f32.mrb[32].mxu0 }
 0x15a   : > { %v3523_v42 = vpack.c.bf16 %v2440_v40, %v2439_v39  ;;  %v1690_v43 = vadd.f32 %v4582_v15, %v1689_v41  ;;  %v1691_v45 = vpop.f32.mrb[33].mxu1  ;;  %v2108_v47 = vpop.f32.mrb[33].mxu0  ;;  %v4237_v40 = vld [vmem:[%s4406_s26 + $0x4c0] ss:$16 sps:$4 sm:$0xff]  }
 0x15b   : > { %v1692_v48 = vpop.f32.mrb[34].mxu1  ;;  %v2109_v53 = vpop.f32.mrb[34].mxu0 }
 0x15c   : > { %3731 = vst [vmem:[%s4594_s14 + $0x38] sm:$0xff] %v3523_v42   ;;  %v2107_v51 = vadd.f32 %v2106_v44, %v1690_v43  ;;  %v1693_v52 = vadd.f32 %v4582_v15, %v1692_v48  ;;  %v1694_v54 = vpop.f32.mrb[35].mxu1  ;;  %v2111_v56 = vpop.f32.mrb[35].mxu0  ;;  %v4238_v43 = vld [vmem:[%s4406_s26 + $0x4c8] ss:$16 sps:$4 sm:$0xff]  }
 0x15d   : > { %v4239_v44 = vld [vmem:[%s4406_s26 + $0x4e4] ss:$16 sps:$4 sm:$0xff]  }
 0x15e   : > { %v2110_v57 = vadd.f32 %v2109_v53, %v1693_v52  ;;  %1904 = vmatmul.mubr.bf16.gmra.mrb[140].mxu1 %v4219_v46  ;;  %2321 = vmatmul.mubr.bf16.gmra.mrb[140].mxu0 %v4220_v49  ;;  %v2441_v58 = vmax.f32 %v2107_v51, 0.0  ;;  %v4241_v49 = vld [vmem:[%s4406_s26 + $0x4ec] ss:$16 sps:$4 sm:$0xff]  }
 0x15f   : > { %1911 = vmatprep.mubr.bf16.mxu1 %v4221_v50  ;;  %2328 = vmatprep.mubr.bf16.mxu0 %v4223_v55 }
 0x160   : > { %v2442_v59 = vmax.f32 %v2110_v57, 0.0 }
 0x161   : > { %v1697_v60 = vpop.f32.mrb[36].mxu1  ;;  %v2114_v63 = vpop.f32.mrb[36].mxu0 }
 0x162   : > { %v3528_v61 = vpack.c.bf16 %v2442_v59, %v2441_v58  ;;  %v1698_v62 = vadd.f32 %v4582_v15, %v1697_v60  ;;  %v1699_v0 = vpop.f32.mrb[37].mxu1  ;;  %v2116_v2 = vpop.f32.mrb[37].mxu0  ;;  %v4243_v59 = vld [vmem:[%s4406_s26 + $0x4e0] ss:$16 sps:$4 sm:$0xff]  }
 0x163   : > { %v1700_v3 = vpop.f32.mrb[38].mxu1  ;;  %v2117_v8 = vpop.f32.mrb[38].mxu0 }
 0x164   : > { %3732 = vst [vmem:[%s4594_s14 + $0x40] sm:$0xff] %v3528_v61   ;;  %v2115_v6 = vadd.f32 %v2114_v63, %v1698_v62  ;;  %v1701_v7 = vadd.f32 %v4582_v15, %v1700_v3  ;;  %v1702_v9 = vpop.f32.mrb[39].mxu1  ;;  %v2119_v11 = vpop.f32.mrb[39].mxu0  ;;  %v4244_v62 = vld [vmem:[%s4406_s26 + $0x4e8] ss:$16 sps:$4 sm:$0xff]  }
 0x165   : > { %v4245_v63 = vld [vmem:[%s4406_s26 + $0x504] ss:$16 sps:$4 sm:$0xff]  }
 0x166   : > { %v2118_v12 = vadd.f32 %v2117_v8, %v1701_v7  ;;  %1912 = vmatmul.mubr.bf16.gmra.mrb[144].mxu1 %v4225_v1  ;;  %2329 = vmatmul.mubr.bf16.gmra.mrb[144].mxu0 %v4226_v4  ;;  %v2443_v13 = vmax.f32 %v2115_v6, 0.0  ;;  %v4247_v4 = vld [vmem:[%s4406_s26 + $0x50c] ss:$16 sps:$4 sm:$0xff]  }
 0x167   : > { %1919 = vmatprep.mubr.bf16.mxu1 %v4227_v5  ;;  %2336 = vmatprep.mubr.bf16.mxu0 %v4229_v10 }
 0x168   : > { %v2444_v14 = vmax.f32 %v2118_v12, 0.0 }
 0x169   : > { %v1705_v16 = vpop.f32.mrb[40].mxu1  ;;  %v2122_v19 = vpop.f32.mrb[40].mxu0 }
 0x16a   : > { %v3533_v17 = vpack.c.bf16 %v2444_v14, %v2443_v13  ;;  %v1706_v18 = vadd.f32 %v4582_v15, %v1705_v16  ;;  %v1707_v20 = vpop.f32.mrb[41].mxu1  ;;  %v2124_v22 = vpop.f32.mrb[41].mxu0  ;;  %v4249_v14 = vld [vmem:[%s4406_s26 + $0x500] ss:$16 sps:$4 sm:$0xff]  }
 0x16b   : > { %v1708_v23 = vpop.f32.mrb[42].mxu1  ;;  %v2125_v28 = vpop.f32.mrb[42].mxu0 }
 0x16c   : > { %3733 = vst [vmem:[%s4594_s14 + $0x48] sm:$0xff] %v3533_v17   ;;  %v2123_v26 = vadd.f32 %v2122_v19, %v1706_v18  ;;  %v1709_v27 = vadd.f32 %v4582_v15, %v1708_v23  ;;  %v1710_v29 = vpop.f32.mrb[43].mxu1  ;;  %v2127_v31 = vpop.f32.mrb[43].mxu0  ;;  %v4250_v18 = vld [vmem:[%s4406_s26 + $0x508] ss:$16 sps:$4 sm:$0xff]  }
 0x16d   : > { %v4251_v19 = vld [vmem:[%s4406_s26 + $0x524] ss:$16 sps:$4 sm:$0xff]  }
 0x16e   : > { %v2126_v32 = vadd.f32 %v2125_v28, %v1709_v27  ;;  %1920 = vmatmul.mubr.bf16.gmra.mrb[148].mxu1 %v4231_v21  ;;  %2337 = vmatmul.mubr.bf16.gmra.mrb[148].mxu0 %v4232_v24  ;;  %v2445_v33 = vmax.f32 %v2123_v26, 0.0  ;;  %v4253_v24 = vld [vmem:[%s4406_s26 + $0x52c] ss:$16 sps:$4 sm:$0xff]  }
 0x16f   : > { %1927 = vmatprep.mubr.bf16.mxu1 %v4233_v25  ;;  %2344 = vmatprep.mubr.bf16.mxu0 %v4235_v30 }
 0x170   : > { %v2446_v34 = vmax.f32 %v2126_v32, 0.0 }
 0x171   : > { %v1713_v35 = vpop.f32.mrb[44].mxu1  ;;  %v2130_v38 = vpop.f32.mrb[44].mxu0 }
 0x172   : > { %v3538_v36 = vpack.c.bf16 %v2446_v34, %v2445_v33  ;;  %v1714_v37 = vadd.f32 %v4582_v15, %v1713_v35  ;;  %v1715_v39 = vpop.f32.mrb[45].mxu1  ;;  %v2132_v41 = vpop.f32.mrb[45].mxu0  ;;  %v4255_v34 = vld [vmem:[%s4406_s26 + $0x520] ss:$16 sps:$4 sm:$0xff]  }
 0x173   : > { %v1716_v42 = vpop.f32.mrb[46].mxu1  ;;  %v2133_v47 = vpop.f32.mrb[46].mxu0 }
 0x174   : > { %3734 = vst [vmem:[%s4594_s14 + $0x50] sm:$0xff] %v3538_v36   ;;  %v2131_v45 = vadd.f32 %v2130_v38, %v1714_v37  ;;  %v1717_v46 = vadd.f32 %v4582_v15, %v1716_v42  ;;  %v1718_v48 = vpop.f32.mrb[47].mxu1  ;;  %v2135_v50 = vpop.f32.mrb[47].mxu0  ;;  %v4256_v37 = vld [vmem:[%s4406_s26 + $0x528] ss:$16 sps:$4 sm:$0xff]  }
 0x175   : > { %v4257_v38 = vld [vmem:[%s4406_s26 + $0x544] ss:$16 sps:$4 sm:$0xff]  }
 0x176   : > { %v2134_v51 = vadd.f32 %v2133_v47, %v1717_v46  ;;  %1928 = vmatmul.mubr.bf16.gmra.mrb[152].mxu1 %v4237_v40  ;;  %2345 = vmatmul.mubr.bf16.gmra.mrb[152].mxu0 %v4238_v43  ;;  %v2447_v52 = vmax.f32 %v2131_v45, 0.0  ;;  %v4259_v43 = vld [vmem:[%s4406_s26 + $0x54c] ss:$16 sps:$4 sm:$0xff]  }
 0x177   : > { %1935 = vmatprep.mubr.bf16.mxu1 %v4239_v44  ;;  %2352 = vmatprep.mubr.bf16.mxu0 %v4241_v49 }
 0x178   : > { %v2448_v53 = vmax.f32 %v2134_v51, 0.0 }
 0x179   : > { %v1721_v54 = vpop.f32.mrb[48].mxu1  ;;  %v2138_v57 = vpop.f32.mrb[48].mxu0 }
 0x17a   : > { %v3543_v55 = vpack.c.bf16 %v2448_v53, %v2447_v52  ;;  %v1722_v56 = vadd.f32 %v4582_v15, %v1721_v54  ;;  %v1723_v58 = vpop.f32.mrb[49].mxu1  ;;  %v2140_v60 = vpop.f32.mrb[49].mxu0  ;;  %v4261_v53 = vld [vmem:[%s4406_s26 + $0x540] ss:$16 sps:$4 sm:$0xff]  }
 0x17b   : > { %v1724_v61 = vpop.f32.mrb[50].mxu1  ;;  %v2141_v2 = vpop.f32.mrb[50].mxu0 }
 0x17c   : > { %3735 = vst [vmem:[%s4594_s14 + $0x58] sm:$0xff] %v3543_v55   ;;  %v2139_v0 = vadd.f32 %v2138_v57, %v1722_v56  ;;  %v1725_v1 = vadd.f32 %v4582_v15, %v1724_v61  ;;  %v1726_v3 = vpop.f32.mrb[51].mxu1  ;;  %v2143_v5 = vpop.f32.mrb[51].mxu0  ;;  %v4262_v56 = vld [vmem:[%s4406_s26 + $0x548] ss:$16 sps:$4 sm:$0xff]  }
 0x17d   : > { %v4263_v57 = vld [vmem:[%s4406_s26 + $0x564] ss:$16 sps:$4 sm:$0xff]  }
 0x17e   : > { %v2142_v6 = vadd.f32 %v2141_v2, %v1725_v1  ;;  %1936 = vmatmul.mubr.bf16.gmra.mrb[156].mxu1 %v4243_v59  ;;  %2353 = vmatmul.mubr.bf16.gmra.mrb[156].mxu0 %v4244_v62  ;;  %v2449_v7 = vmax.f32 %v2139_v0, 0.0  ;;  %v4265_v62 = vld [vmem:[%s4406_s26 + $0x56c] ss:$16 sps:$4 sm:$0xff]  }
 0x17f   : > { %1943 = vmatprep.mubr.bf16.mxu1 %v4245_v63  ;;  %2360 = vmatprep.mubr.bf16.mxu0 %v4247_v4 }
 0x180   : > { %v2450_v8 = vmax.f32 %v2142_v6, 0.0 }
 0x181   : > { %v1729_v9 = vpop.f32.mrb[52].mxu1  ;;  %v2146_v12 = vpop.f32.mrb[52].mxu0 }
 0x182   : > { %v3548_v10 = vpack.c.bf16 %v2450_v8, %v2449_v7  ;;  %v1730_v11 = vadd.f32 %v4582_v15, %v1729_v9  ;;  %v1731_v13 = vpop.f32.mrb[53].mxu1  ;;  %v2148_v16 = vpop.f32.mrb[53].mxu0  ;;  %v4267_v8 = vld [vmem:[%s4406_s26 + $0x560] ss:$16 sps:$4 sm:$0xff]  }
 0x183   : > { %v1732_v17 = vpop.f32.mrb[54].mxu1  ;;  %v2149_v22 = vpop.f32.mrb[54].mxu0 }
 0x184   : > { %3736 = vst [vmem:[%s4594_s14 + $0x60] sm:$0xff] %v3548_v10   ;;  %v2147_v20 = vadd.f32 %v2146_v12, %v1730_v11  ;;  %v1733_v21 = vadd.f32 %v4582_v15, %v1732_v17  ;;  %v1734_v23 = vpop.f32.mrb[55].mxu1  ;;  %v2151_v25 = vpop.f32.mrb[55].mxu0  ;;  %v4268_v11 = vld [vmem:[%s4406_s26 + $0x568] ss:$16 sps:$4 sm:$0xff]  }
 0x185   : > { %v4269_v12 = vld [vmem:[%s4406_s26 + $0x584] ss:$16 sps:$4 sm:$0xff]  }
 0x186   : > { %v2150_v26 = vadd.f32 %v2149_v22, %v1733_v21  ;;  %1944 = vmatmul.mubr.bf16.gmra.mrb[160].mxu1 %v4249_v14  ;;  %2361 = vmatmul.mubr.bf16.gmra.mrb[160].mxu0 %v4250_v18  ;;  %v2451_v27 = vmax.f32 %v2147_v20, 0.0  ;;  %v4271_v18 = vld [vmem:[%s4406_s26 + $0x58c] ss:$16 sps:$4 sm:$0xff]  }
 0x187   : > { %1951 = vmatprep.mubr.bf16.mxu1 %v4251_v19  ;;  %2368 = vmatprep.mubr.bf16.mxu0 %v4253_v24 }
 0x188   : > { %v2452_v28 = vmax.f32 %v2150_v26, 0.0 }
 0x189   : > { %v1737_v29 = vpop.f32.mrb[56].mxu1  ;;  %v2154_v32 = vpop.f32.mrb[56].mxu0 }
 0x18a   : > { %v3553_v30 = vpack.c.bf16 %v2452_v28, %v2451_v27  ;;  %v1738_v31 = vadd.f32 %v4582_v15, %v1737_v29  ;;  %v1739_v33 = vpop.f32.mrb[57].mxu1  ;;  %v2156_v35 = vpop.f32.mrb[57].mxu0  ;;  %v4273_v28 = vld [vmem:[%s4406_s26 + $0x580] ss:$16 sps:$4 sm:$0xff]  }
 0x18b   : > { %v1740_v36 = vpop.f32.mrb[58].mxu1  ;;  %v2157_v41 = vpop.f32.mrb[58].mxu0 }
 0x18c   : > { %3737 = vst [vmem:[%s4594_s14 + $0x68] sm:$0xff] %v3553_v30   ;;  %v2155_v39 = vadd.f32 %v2154_v32, %v1738_v31  ;;  %v1741_v40 = vadd.f32 %v4582_v15, %v1740_v36  ;;  %v1742_v42 = vpop.f32.mrb[59].mxu1  ;;  %v2159_v44 = vpop.f32.mrb[59].mxu0  ;;  %v4274_v31 = vld [vmem:[%s4406_s26 + $0x588] ss:$16 sps:$4 sm:$0xff]  }
 0x18d   : > { %v4275_v32 = vld [vmem:[%s4406_s26 + $0x5a4] ss:$16 sps:$4 sm:$0xff]  }
 0x18e   : > { %v2158_v45 = vadd.f32 %v2157_v41, %v1741_v40  ;;  %1952 = vmatmul.mubr.bf16.gmra.mrb[164].mxu1 %v4255_v34  ;;  %2369 = vmatmul.mubr.bf16.gmra.mrb[164].mxu0 %v4256_v37  ;;  %v2453_v46 = vmax.f32 %v2155_v39, 0.0  ;;  %v4277_v37 = vld [vmem:[%s4406_s26 + $0x5ac] ss:$16 sps:$4 sm:$0xff]  }
 0x18f   : > { %1959 = vmatprep.mubr.bf16.mxu1 %v4257_v38  ;;  %2376 = vmatprep.mubr.bf16.mxu0 %v4259_v43 }
 0x190   : > { %v2454_v47 = vmax.f32 %v2158_v45, 0.0 }
 0x191   : > { %v1745_v48 = vpop.f32.mrb[60].mxu1  ;;  %v2162_v51 = vpop.f32.mrb[60].mxu0 }
 0x192   : > { %v3558_v49 = vpack.c.bf16 %v2454_v47, %v2453_v46  ;;  %v1746_v50 = vadd.f32 %v4582_v15, %v1745_v48  ;;  %v1747_v52 = vpop.f32.mrb[61].mxu1  ;;  %v2164_v54 = vpop.f32.mrb[61].mxu0  ;;  %v4279_v47 = vld [vmem:[%s4406_s26 + $0x5a0] ss:$16 sps:$4 sm:$0xff]  }
 0x193   : > { %v1748_v55 = vpop.f32.mrb[62].mxu1  ;;  %v2165_v60 = vpop.f32.mrb[62].mxu0 }
 0x194   : > { %3738 = vst [vmem:[%s4594_s14 + $0x70] sm:$0xff] %v3558_v49   ;;  %v2163_v58 = vadd.f32 %v2162_v51, %v1746_v50  ;;  %v1749_v59 = vadd.f32 %v4582_v15, %v1748_v55  ;;  %v1750_v61 = vpop.f32.mrb[63].mxu1  ;;  %v2167_v63 = vpop.f32.mrb[63].mxu0  ;;  %v4280_v50 = vld [vmem:[%s4406_s26 + $0x5a8] ss:$16 sps:$4 sm:$0xff]  }
 0x195   : > { %v4281_v51 = vld [vmem:[%s4406_s26 + $0x5c4] ss:$16 sps:$4 sm:$0xff]  }
 0x196   : > { %v2166_v0 = vadd.f32 %v2165_v60, %v1749_v59  ;;  %1960 = vmatmul.mubr.bf16.gmra.mrb[168].mxu1 %v4261_v53  ;;  %2377 = vmatmul.mubr.bf16.gmra.mrb[168].mxu0 %v4262_v56  ;;  %v2455_v1 = vmax.f32 %v2163_v58, 0.0  ;;  %v4283_v56 = vld [vmem:[%s4406_s26 + $0x5cc] ss:$16 sps:$4 sm:$0xff]  }
 0x197   : > { %1967 = vmatprep.mubr.bf16.mxu1 %v4263_v57  ;;  %2384 = vmatprep.mubr.bf16.mxu0 %v4265_v62 }
 0x198   : > { %v2456_v2 = vmax.f32 %v2166_v0, 0.0 }
 0x199   : > { %v1753_v3 = vpop.f32.mrb[64].mxu1  ;;  %v2170_v6 = vpop.f32.mrb[64].mxu0 }
 0x19a   : > { %v3563_v4 = vpack.c.bf16 %v2456_v2, %v2455_v1  ;;  %v1754_v5 = vadd.f32 %v4582_v15, %v1753_v3  ;;  %v1755_v7 = vpop.f32.mrb[65].mxu1  ;;  %v2172_v9 = vpop.f32.mrb[65].mxu0  ;;  %v4285_v2 = vld [vmem:[%s4406_s26 + $0x5c0] ss:$16 sps:$4 sm:$0xff]  }
 0x19b   : > { %v1756_v10 = vpop.f32.mrb[66].mxu1  ;;  %v2173_v16 = vpop.f32.mrb[66].mxu0 }
 0x19c   : > { %3739 = vst [vmem:[%s4594_s14 + $0x78] sm:$0xff] %v3563_v4   ;;  %v2171_v13 = vadd.f32 %v2170_v6, %v1754_v5  ;;  %v1757_v14 = vadd.f32 %v4582_v15, %v1756_v10  ;;  %v1758_v17 = vpop.f32.mrb[67].mxu1  ;;  %v2175_v19 = vpop.f32.mrb[67].mxu0  ;;  %v4286_v5 = vld [vmem:[%s4406_s26 + $0x5c8] ss:$16 sps:$4 sm:$0xff]  }
 0x19d   : > { %v4287_v6 = vld [vmem:[%s4406_s26 + $0x5e4] ss:$16 sps:$4 sm:$0xff]  }
 0x19e   : > { %v2174_v20 = vadd.f32 %v2173_v16, %v1757_v14  ;;  %1968 = vmatmul.mubr.bf16.gmra.mrb[172].mxu1 %v4267_v8  ;;  %2385 = vmatmul.mubr.bf16.gmra.mrb[172].mxu0 %v4268_v11  ;;  %v2457_v21 = vmax.f32 %v2171_v13, 0.0  ;;  %v4289_v11 = vld [vmem:[%s4406_s26 + $0x5ec] ss:$16 sps:$4 sm:$0xff]  }
 0x19f   : > { %1975 = vmatprep.mubr.bf16.mxu1 %v4269_v12  ;;  %2392 = vmatprep.mubr.bf16.mxu0 %v4271_v18 }
 0x1a0   : > { %v2458_v22 = vmax.f32 %v2174_v20, 0.0 }
 0x1a1   : > { %v1761_v23 = vpop.f32.mrb[68].mxu1  ;;  %v2178_v26 = vpop.f32.mrb[68].mxu0 }
 0x1a2   : > { %v3568_v24 = vpack.c.bf16 %v2458_v22, %v2457_v21  ;;  %v1762_v25 = vadd.f32 %v4582_v15, %v1761_v23  ;;  %v1763_v27 = vpop.f32.mrb[69].mxu1  ;;  %v2180_v29 = vpop.f32.mrb[69].mxu0  ;;  %v4291_v22 = vld [vmem:[%s4406_s26 + $0x5e0] ss:$16 sps:$4 sm:$0xff]  }
 0x1a3   : > { %v1764_v30 = vpop.f32.mrb[70].mxu1  ;;  %v2181_v35 = vpop.f32.mrb[70].mxu0 }
 0x1a4   : > { %3740 = vst [vmem:[%s4594_s14 + $0x80] sm:$0xff] %v3568_v24   ;;  %v2179_v33 = vadd.f32 %v2178_v26, %v1762_v25  ;;  %v1765_v34 = vadd.f32 %v4582_v15, %v1764_v30  ;;  %v1766_v36 = vpop.f32.mrb[71].mxu1  ;;  %v2183_v38 = vpop.f32.mrb[71].mxu0  ;;  %v4292_v25 = vld [vmem:[%s4406_s26 + $0x5e8] ss:$16 sps:$4 sm:$0xff]  }
 0x1a6   : > { %v2182_v39 = vadd.f32 %v2181_v35, %v1765_v34  ;;  %1976 = vmatmul.mubr.bf16.gmra.mrb[176].mxu1 %v4273_v28  ;;  %2393 = vmatmul.mubr.bf16.gmra.mrb[176].mxu0 %v4274_v31  ;;  %v2459_v40 = vmax.f32 %v2179_v33, 0.0 }
 0x1a7   : > { %1983 = vmatprep.mubr.bf16.mxu1 %v4275_v32  ;;  %2400 = vmatprep.mubr.bf16.mxu0 %v4277_v37 }
 0x1a8   : > { %v2460_v41 = vmax.f32 %v2182_v39, 0.0 }
 0x1a9   : > { %v1769_v42 = vpop.f32.mrb[72].mxu1  ;;  %v2186_v45 = vpop.f32.mrb[72].mxu0 }
 0x1aa   : > { %v3573_v43 = vpack.c.bf16 %v2460_v41, %v2459_v40  ;;  %v1770_v44 = vadd.f32 %v4582_v15, %v1769_v42  ;;  %v1771_v46 = vpop.f32.mrb[73].mxu1  ;;  %v2188_v48 = vpop.f32.mrb[73].mxu0  ;;  %v4739_v42 = vld [vmem:[%s4826_s2] ss:$0 sm:$0xff] }
 0x1ab   : > { %v1772_v49 = vpop.f32.mrb[74].mxu1  ;;  %v2189_v54 = vpop.f32.mrb[74].mxu0 }
 0x1ac   : > { %3741 = vst [vmem:[%s4594_s14 + $0x88] sm:$0xff] %v3573_v43   ;;  %v2187_v52 = vadd.f32 %v2186_v45, %v1770_v44  ;;  %v1773_v53 = vadd.f32 %v4582_v15, %v1772_v49  ;;  %v1774_v55 = vpop.f32.mrb[75].mxu1  ;;  %v2191_v57 = vpop.f32.mrb[75].mxu0 }
 0x1ae   : > { %v2190_v58 = vadd.f32 %v2189_v54, %v1773_v53  ;;  %1984 = vmatmul.mubr.bf16.gmra.mrb[180].mxu1 %v4279_v47  ;;  %2401 = vmatmul.mubr.bf16.gmra.mrb[180].mxu0 %v4280_v50  ;;  %v2461_v59 = vmax.f32 %v2187_v52, 0.0 }
 0x1af   : > { %1991 = vmatprep.mubr.bf16.mxu1 %v4281_v51  ;;  %2408 = vmatprep.mubr.bf16.mxu0 %v4283_v56 }
 0x1b0   : > { %v2462_v60 = vmax.f32 %v2190_v58, 0.0 }
 0x1b1   : > { %v1777_v61 = vpop.f32.mrb[76].mxu1  ;;  %v2194_v0 = vpop.f32.mrb[76].mxu0 }
 0x1b2   : > { %v3578_v62 = vpack.c.bf16 %v2462_v60, %v2461_v59  ;;  %v1778_v63 = vadd.f32 %v4582_v15, %v1777_v61  ;;  %v1779_v1 = vpop.f32.mrb[77].mxu1  ;;  %v2196_v3 = vpop.f32.mrb[77].mxu0 }
 0x1b3   : > { %v1780_v4 = vpop.f32.mrb[78].mxu1  ;;  %v2197_v9 = vpop.f32.mrb[78].mxu0 }
 0x1b4   : > { %3742 = vst [vmem:[%s4594_s14 + $0x90] sm:$0xff] %v3578_v62   ;;  %v2195_v7 = vadd.f32 %v2194_v0, %v1778_v63  ;;  %v1781_v8 = vadd.f32 %v4582_v15, %v1780_v4  ;;  %v1782_v10 = vpop.f32.mrb[79].mxu1  ;;  %v2199_v12 = vpop.f32.mrb[79].mxu0 }
 0x1b6   : > { %v2198_v13 = vadd.f32 %v2197_v9, %v1781_v8  ;;  %1992 = vmatmul.mubr.bf16.gmra.mrb[184].mxu1 %v4285_v2  ;;  %2409 = vmatmul.mubr.bf16.gmra.mrb[184].mxu0 %v4286_v5  ;;  %v2463_v14 = vmax.f32 %v2195_v7, 0.0 }
 0x1b7   : > { %1999 = vmatprep.mubr.bf16.mxu1 %v4287_v6  ;;  %2416 = vmatprep.mubr.bf16.mxu0 %v4289_v11 }
 0x1b8   : > { %v2464_v16 = vmax.f32 %v2198_v13, 0.0 }
 0x1b9   : > { %v1785_v17 = vpop.f32.mrb[80].mxu1  ;;  %v2202_v20 = vpop.f32.mrb[80].mxu0 }
 0x1ba   : > { %v3583_v18 = vpack.c.bf16 %v2464_v16, %v2463_v14  ;;  %v1786_v19 = vadd.f32 %v4582_v15, %v1785_v17  ;;  %v1787_v21 = vpop.f32.mrb[81].mxu1  ;;  %v2204_v23 = vpop.f32.mrb[81].mxu0 }
 0x1bb   : > { %v1788_v24 = vpop.f32.mrb[82].mxu1  ;;  %v2205_v28 = vpop.f32.mrb[82].mxu0 }
 0x1bc   : > { %3743 = vst [vmem:[%s4594_s14 + $0x98] sm:$0xff] %v3583_v18   ;;  %v2203_v26 = vadd.f32 %v2202_v20, %v1786_v19  ;;  %v1789_v27 = vadd.f32 %v4582_v15, %v1788_v24  ;;  %v1790_v29 = vpop.f32.mrb[83].mxu1  ;;  %v2207_v30 = vpop.f32.mrb[83].mxu0 }
 0x1be   : > { %v2206_v31 = vadd.f32 %v2205_v28, %v1789_v27  ;;  %2000 = vmatmul.mubr.bf16.gmra.mrb[188].mxu1 %v4291_v22  ;;  %2417 = vmatmul.mubr.bf16.gmra.mrb[188].mxu0 %v4292_v25  ;;  %v2465_v32 = vmax.f32 %v2203_v26, 0.0 }
 0x1c0   : > { %v2466_v33 = vmax.f32 %v2206_v31, 0.0 }
 0x1c1   : > { %v1793_v34 = vpop.f32.mrb[84].mxu1  ;;  %v2210_v37 = vpop.f32.mrb[84].mxu0 }
 0x1c2   : > { %v3588_v35 = vpack.c.bf16 %v2466_v33, %v2465_v32  ;;  %v1794_v36 = vadd.f32 %v4582_v15, %v1793_v34  ;;  %v1795_v38 = vpop.f32.mrb[85].mxu1  ;;  %v2212_v39 = vpop.f32.mrb[85].mxu0 }
 0x1c3   : > { %v1796_v40 = vpop.f32.mrb[86].mxu1  ;;  %v2213_v44 = vpop.f32.mrb[86].mxu0 }
 0x1c4   : > { %3744 = vst [vmem:[%s4594_s14 + $0xa0] sm:$0xff] %v3588_v35   ;;  %v2211_v41 = vadd.f32 %v2210_v37, %v1794_v36  ;;  %v1797_v43 = vadd.f32 %v4739_v42, %v1796_v40  ;;  %v1798_v45 = vpop.f32.mrb[87].mxu1  ;;  %v2215_v46 = vpop.f32.mrb[87].mxu0 }
 0x1c6   : > { %v2214_v47 = vadd.f32 %v2213_v44, %v1797_v43  ;;  %v2467_v48 = vmax.f32 %v2211_v41, 0.0 }
 0x1c8   : > { %v2468_v15 = vmax.f32 %v2214_v47, 0.0 }
 0x1c9   : > { %v1801_v49 = vpop.f32.mrb[88].mxu1  ;;  %v2218_v52 = vpop.f32.mrb[88].mxu0 }
 0x1ca   : > { %v3593_v50 = vpack.c.bf16 %v2468_v15, %v2467_v48  ;;  %v1802_v51 = vadd.f32 %v4739_v42, %v1801_v49  ;;  %v1803_v53 = vpop.f32.mrb[89].mxu1  ;;  %v2220_v54 = vpop.f32.mrb[89].mxu0 }
 0x1cb   : > { %v1804_v55 = vpop.f32.mrb[90].mxu1  ;;  %v2221_v58 = vpop.f32.mrb[90].mxu0 }
 0x1cc   : > { %3745 = vst [vmem:[%s4594_s14 + $0xa8] sm:$0xff] %v3593_v50   ;;  %v2219_v56 = vadd.f32 %v2218_v52, %v1802_v51  ;;  %v1805_v57 = vadd.f32 %v4739_v42, %v1804_v55  ;;  %v1806_v59 = vpop.f32.mrb[91].mxu1  ;;  %v2223_v60 = vpop.f32.mrb[91].mxu0 }
 0x1ce   : > { %v2222_v61 = vadd.f32 %v2221_v58, %v1805_v57  ;;  %v2469_v62 = vmax.f32 %v2219_v56, 0.0 }
 0x1d0   : > { %v2470_v63 = vmax.f32 %v2222_v61, 0.0 }
 0x1d1   : > { %v1809_v0 = vpop.f32.mrb[92].mxu1  ;;  %v2226_v3 = vpop.f32.mrb[92].mxu0 }
 0x1d2   : > { %v3598_v1 = vpack.c.bf16 %v2470_v63, %v2469_v62  ;;  %v1810_v2 = vadd.f32 %v4739_v42, %v1809_v0  ;;  %v1811_v4 = vpop.f32.mrb[93].mxu1  ;;  %v2228_v5 = vpop.f32.mrb[93].mxu0 }
 0x1d3   : > { %v1812_v6 = vpop.f32.mrb[94].mxu1  ;;  %v2229_v9 = vpop.f32.mrb[94].mxu0 }
 0x1d4   : > { %3746 = vst [vmem:[%s4594_s14 + $0xb0] sm:$0xff] %v3598_v1   ;;  %v2227_v7 = vadd.f32 %v2226_v3, %v1810_v2  ;;  %v1813_v8 = vadd.f32 %v4739_v42, %v1812_v6  ;;  %v1814_v10 = vpop.f32.mrb[95].mxu1  ;;  %v2231_v11 = vpop.f32.mrb[95].mxu0 }
 0x1d6   : > { %v2230_v12 = vadd.f32 %v2229_v9, %v1813_v8  ;;  %v2471_v13 = vmax.f32 %v2227_v7, 0.0 }
 0x1d8   : > { %v2472_v14 = vmax.f32 %v2230_v12, 0.0 }
 0x1d9   : > { %v1817_v16 = vpop.f32.mrb[96].mxu1  ;;  %v2234_v19 = vpop.f32.mrb[96].mxu0 }
 0x1da   : > { %v3603_v17 = vpack.c.bf16 %v2472_v14, %v2471_v13  ;;  %v1818_v18 = vadd.f32 %v4739_v42, %v1817_v16  ;;  %v1819_v20 = vpop.f32.mrb[97].mxu1  ;;  %v2236_v21 = vpop.f32.mrb[97].mxu0 }
 0x1db   : > { %v1820_v22 = vpop.f32.mrb[98].mxu1  ;;  %v2237_v25 = vpop.f32.mrb[98].mxu0 }
 0x1dc   : > { %3747 = vst [vmem:[%s4594_s14 + $0xb8] sm:$0xff] %v3603_v17   ;;  %v2235_v23 = vadd.f32 %v2234_v19, %v1818_v18  ;;  %v1821_v24 = vadd.f32 %v4739_v42, %v1820_v22  ;;  %v1822_v26 = vpop.f32.mrb[99].mxu1  ;;  %v2239_v27 = vpop.f32.mrb[99].mxu0 }
 0x1de   : > { %v2238_v28 = vadd.f32 %v2237_v25, %v1821_v24  ;;  %v2473_v29 = vmax.f32 %v2235_v23, 0.0 }
 0x1e0   : > { %v2474_v30 = vmax.f32 %v2238_v28, 0.0 }
 0x1e1   : > { %v1825_v31 = vpop.f32.mrb[100].mxu1  ;;  %v2242_v34 = vpop.f32.mrb[100].mxu0 }
 0x1e2   : > { %v3608_v32 = vpack.c.bf16 %v2474_v30, %v2473_v29  ;;  %v1826_v33 = vadd.f32 %v4739_v42, %v1825_v31  ;;  %v1827_v35 = vpop.f32.mrb[101].mxu1  ;;  %v2244_v36 = vpop.f32.mrb[101].mxu0 }
 0x1e3   : > { %v1828_v37 = vpop.f32.mrb[102].mxu1  ;;  %v2245_v40 = vpop.f32.mrb[102].mxu0 }
 0x1e4   : > { %3748 = vst [vmem:[%s4594_s14 + $0xc0] sm:$0xff] %v3608_v32   ;;  %v2243_v38 = vadd.f32 %v2242_v34, %v1826_v33  ;;  %v1829_v39 = vadd.f32 %v4739_v42, %v1828_v37  ;;  %v1830_v41 = vpop.f32.mrb[103].mxu1  ;;  %v2247_v43 = vpop.f32.mrb[103].mxu0 }
 0x1e6   : > { %v2246_v44 = vadd.f32 %v2245_v40, %v1829_v39  ;;  %v2475_v45 = vmax.f32 %v2243_v38, 0.0 }
 0x1e8   : > { %v2476_v46 = vmax.f32 %v2246_v44, 0.0 }
 0x1e9   : > { %v1833_v47 = vpop.f32.mrb[104].mxu1  ;;  %v2250_v49 = vpop.f32.mrb[104].mxu0 }
 0x1ea   : > { %v3613_v48 = vpack.c.bf16 %v2476_v46, %v2475_v45  ;;  %v1834_v15 = vadd.f32 %v4739_v42, %v1833_v47  ;;  %v1835_v50 = vpop.f32.mrb[105].mxu1  ;;  %v2252_v51 = vpop.f32.mrb[105].mxu0 }
 0x1eb   : > { %v1836_v52 = vpop.f32.mrb[106].mxu1  ;;  %v2253_v55 = vpop.f32.mrb[106].mxu0 }
 0x1ec   : > { %3749 = vst [vmem:[%s4594_s14 + $0xc8] sm:$0xff] %v3613_v48   ;;  %v2251_v53 = vadd.f32 %v2250_v49, %v1834_v15  ;;  %v1837_v54 = vadd.f32 %v4739_v42, %v1836_v52  ;;  %v1838_v56 = vpop.f32.mrb[107].mxu1  ;;  %v2255_v57 = vpop.f32.mrb[107].mxu0 }
 0x1ee   : > { %v2254_v58 = vadd.f32 %v2253_v55, %v1837_v54  ;;  %v2477_v59 = vmax.f32 %v2251_v53, 0.0 }
 0x1f0   : > { %v2478_v60 = vmax.f32 %v2254_v58, 0.0 }
 0x1f1   : > { %v1841_v61 = vpop.f32.mrb[108].mxu1  ;;  %v2258_v0 = vpop.f32.mrb[108].mxu0 }
 0x1f2   : > { %v3618_v62 = vpack.c.bf16 %v2478_v60, %v2477_v59  ;;  %v1842_v63 = vadd.f32 %v4739_v42, %v1841_v61  ;;  %v1843_v1 = vpop.f32.mrb[109].mxu1  ;;  %v2260_v2 = vpop.f32.mrb[109].mxu0 }
 0x1f3   : > { %v1844_v3 = vpop.f32.mrb[110].mxu1  ;;  %v2261_v6 = vpop.f32.mrb[110].mxu0 }
 0x1f4   : > { %3750 = vst [vmem:[%s4594_s14 + $0xd0] sm:$0xff] %v3618_v62   ;;  %v2259_v4 = vadd.f32 %v2258_v0, %v1842_v63  ;;  %v1845_v5 = vadd.f32 %v4739_v42, %v1844_v3  ;;  %v1846_v7 = vpop.f32.mrb[111].mxu1  ;;  %v2263_v8 = vpop.f32.mrb[111].mxu0 }
 0x1f6   : > { %v2262_v9 = vadd.f32 %v2261_v6, %v1845_v5  ;;  %v2479_v10 = vmax.f32 %v2259_v4, 0.0 }
 0x1f8   : > { %v2480_v11 = vmax.f32 %v2262_v9, 0.0 }
 0x1f9   : > { %v1849_v12 = vpop.f32.mrb[112].mxu1  ;;  %v2266_v16 = vpop.f32.mrb[112].mxu0 }
 0x1fa   : > { %v3623_v13 = vpack.c.bf16 %v2480_v11, %v2479_v10  ;;  %v1850_v14 = vadd.f32 %v4739_v42, %v1849_v12  ;;  %v1851_v17 = vpop.f32.mrb[113].mxu1  ;;  %v2268_v18 = vpop.f32.mrb[113].mxu0 }
 0x1fb   : > { %v1852_v19 = vpop.f32.mrb[114].mxu1  ;;  %v2269_v22 = vpop.f32.mrb[114].mxu0 }
 0x1fc   : > { %3751 = vst [vmem:[%s4594_s14 + $0xd8] sm:$0xff] %v3623_v13   ;;  %v2267_v20 = vadd.f32 %v2266_v16, %v1850_v14  ;;  %v1853_v21 = vadd.f32 %v4739_v42, %v1852_v19  ;;  %v1854_v23 = vpop.f32.mrb[115].mxu1  ;;  %v2271_v24 = vpop.f32.mrb[115].mxu0 }
 0x1fe   : > { %v2270_v25 = vadd.f32 %v2269_v22, %v1853_v21  ;;  %v2481_v26 = vmax.f32 %v2267_v20, 0.0 }
 0x200   : > { %v2482_v27 = vmax.f32 %v2270_v25, 0.0 }
 0x201   : > { %v1857_v28 = vpop.f32.mrb[116].mxu1  ;;  %v2274_v31 = vpop.f32.mrb[116].mxu0 }
 0x202   : > { %v3628_v29 = vpack.c.bf16 %v2482_v27, %v2481_v26  ;;  %v1858_v30 = vadd.f32 %v4739_v42, %v1857_v28  ;;  %v1859_v32 = vpop.f32.mrb[117].mxu1  ;;  %v2276_v33 = vpop.f32.mrb[117].mxu0 }
 0x203   : > { %v1860_v34 = vpop.f32.mrb[118].mxu1  ;;  %v2277_v37 = vpop.f32.mrb[118].mxu0 }
 0x204   : > { %3752 = vst [vmem:[%s4594_s14 + $0xe0] sm:$0xff] %v3628_v29   ;;  %v2275_v35 = vadd.f32 %v2274_v31, %v1858_v30  ;;  %v1861_v36 = vadd.f32 %v4739_v42, %v1860_v34  ;;  %v1862_v38 = vpop.f32.mrb[119].mxu1  ;;  %v2279_v39 = vpop.f32.mrb[119].mxu0 }
 0x206   : > { %v2278_v40 = vadd.f32 %v2277_v37, %v1861_v36  ;;  %v2483_v41 = vmax.f32 %v2275_v35, 0.0 }
 0x208   : > { %v2484_v43 = vmax.f32 %v2278_v40, 0.0 }
 0x209   : > { %v1865_v44 = vpop.f32.mrb[120].mxu1  ;;  %v2282_v47 = vpop.f32.mrb[120].mxu0 }
 0x20a   : > { %v3633_v45 = vpack.c.bf16 %v2484_v43, %v2483_v41  ;;  %v1866_v46 = vadd.f32 %v4739_v42, %v1865_v44  ;;  %v1867_v48 = vpop.f32.mrb[121].mxu1  ;;  %v2284_v15 = vpop.f32.mrb[121].mxu0 }
 0x20b   : > { %v1868_v49 = vpop.f32.mrb[122].mxu1  ;;  %v2285_v52 = vpop.f32.mrb[122].mxu0 }
 0x20c   : > { %3753 = vst [vmem:[%s4594_s14 + $0xe8] sm:$0xff] %v3633_v45   ;;  %v2283_v50 = vadd.f32 %v2282_v47, %v1866_v46  ;;  %v1869_v51 = vadd.f32 %v4739_v42, %v1868_v49  ;;  %v1870_v53 = vpop.f32.mrb[123].mxu1  ;;  %v2287_v54 = vpop.f32.mrb[123].mxu0 }
 0x20e   : > { %v2286_v55 = vadd.f32 %v2285_v52, %v1869_v51  ;;  %v2485_v56 = vmax.f32 %v2283_v50, 0.0 }
 0x210   : > { %v2486_v57 = vmax.f32 %v2286_v55, 0.0 }
 0x211   : > { %v1873_v58 = vpop.f32.mrb[124].mxu1  ;;  %v2290_v61 = vpop.f32.mrb[124].mxu0 }
 0x212   : > { %v3638_v59 = vpack.c.bf16 %v2486_v57, %v2485_v56  ;;  %v1874_v60 = vadd.f32 %v4739_v42, %v1873_v58  ;;  %v1875_v62 = vpop.f32.mrb[125].mxu1  ;;  %v2292_v63 = vpop.f32.mrb[125].mxu0 }
 0x213   : > { %v1876_v0 = vpop.f32.mrb[126].mxu1  ;;  %v2293_v3 = vpop.f32.mrb[126].mxu0 }
 0x214   : > { %3754 = vst [vmem:[%s4594_s14 + $0xf0] sm:$0xff] %v3638_v59   ;;  %v2291_v1 = vadd.f32 %v2290_v61, %v1874_v60  ;;  %v1877_v2 = vadd.f32 %v4739_v42, %v1876_v0  ;;  %v1878_v4 = vpop.f32.mrb[127].mxu1  ;;  %v2295_v5 = vpop.f32.mrb[127].mxu0 }
 0x216   : > { %v2294_v6 = vadd.f32 %v2293_v3, %v1877_v2  ;;  %v2487_v7 = vmax.f32 %v2291_v1, 0.0 }
 0x218   : > { %v2488_v8 = vmax.f32 %v2294_v6, 0.0 }
 0x219   : > { %v1881_v9 = vpop.f32.mrb[128].mxu1  ;;  %v2298_v12 = vpop.f32.mrb[128].mxu0 }
 0x21a   : > { %v3643_v10 = vpack.c.bf16 %v2488_v8, %v2487_v7  ;;  %v1882_v11 = vadd.f32 %v4739_v42, %v1881_v9  ;;  %v1883_v13 = vpop.f32.mrb[129].mxu1  ;;  %v2300_v14 = vpop.f32.mrb[129].mxu0 }
 0x21b   : > { %v1884_v16 = vpop.f32.mrb[130].mxu1  ;;  %v2301_v19 = vpop.f32.mrb[130].mxu0 }
 0x21c   : > { %3755 = vst [vmem:[%s4594_s14 + $0xf8] sm:$0xff] %v3643_v10   ;;  %v2299_v17 = vadd.f32 %v2298_v12, %v1882_v11  ;;  %v1885_v18 = vadd.f32 %v4739_v42, %v1884_v16  ;;  %v1886_v20 = vpop.f32.mrb[131].mxu1  ;;  %v2303_v21 = vpop.f32.mrb[131].mxu0 }
 0x21e   : > { %v2302_v22 = vadd.f32 %v2301_v19, %v1885_v18  ;;  %v2489_v23 = vmax.f32 %v2299_v17, 0.0 }
 0x220   : > { %v2490_v24 = vmax.f32 %v2302_v22, 0.0 }
 0x221   : > { %v1889_v25 = vpop.f32.mrb[132].mxu1  ;;  %v2306_v28 = vpop.f32.mrb[132].mxu0 }
 0x222   : > { %v3648_v26 = vpack.c.bf16 %v2490_v24, %v2489_v23  ;;  %v1890_v27 = vadd.f32 %v4739_v42, %v1889_v25  ;;  %v1891_v29 = vpop.f32.mrb[133].mxu1  ;;  %v2308_v30 = vpop.f32.mrb[133].mxu0 }
 0x223   : > { %v1892_v31 = vpop.f32.mrb[134].mxu1  ;;  %v2309_v34 = vpop.f32.mrb[134].mxu0 }
 0x224   : > { %3756 = vst [vmem:[%s4594_s14 + $0x100] sm:$0xff] %v3648_v26   ;;  %v2307_v32 = vadd.f32 %v2306_v28, %v1890_v27  ;;  %v1893_v33 = vadd.f32 %v4739_v42, %v1892_v31  ;;  %v1894_v35 = vpop.f32.mrb[135].mxu1  ;;  %v2311_v36 = vpop.f32.mrb[135].mxu0 }
 0x226   : > { %v2310_v37 = vadd.f32 %v2309_v34, %v1893_v33  ;;  %v2491_v38 = vmax.f32 %v2307_v32, 0.0 }
 0x228   : > { %v2492_v39 = vmax.f32 %v2310_v37, 0.0 }
 0x229   : > { %v1897_v40 = vpop.f32.mrb[136].mxu1  ;;  %v2314_v44 = vpop.f32.mrb[136].mxu0 }
 0x22a   : > { %v3653_v41 = vpack.c.bf16 %v2492_v39, %v2491_v38  ;;  %v1898_v43 = vadd.f32 %v4739_v42, %v1897_v40  ;;  %v1899_v45 = vpop.f32.mrb[137].mxu1  ;;  %v2316_v46 = vpop.f32.mrb[137].mxu0 }
 0x22b   : > { %v1900_v47 = vpop.f32.mrb[138].mxu1  ;;  %v2317_v49 = vpop.f32.mrb[138].mxu0 }
 0x22c   : > { %3757 = vst [vmem:[%s4594_s14 + $0x108] sm:$0xff] %v3653_v41   ;;  %v2315_v48 = vadd.f32 %v2314_v44, %v1898_v43  ;;  %v1901_v15 = vadd.f32 %v4739_v42, %v1900_v47  ;;  %v1902_v50 = vpop.f32.mrb[139].mxu1  ;;  %v2319_v51 = vpop.f32.mrb[139].mxu0 }
 0x22e   : > { %v2318_v52 = vadd.f32 %v2317_v49, %v1901_v15  ;;  %v2493_v53 = vmax.f32 %v2315_v48, 0.0 }
 0x230   : > { %v2494_v54 = vmax.f32 %v2318_v52, 0.0 }
 0x231   : > { %v1905_v55 = vpop.f32.mrb[140].mxu1  ;;  %v2322_v58 = vpop.f32.mrb[140].mxu0 }
 0x232   : > { %v3658_v56 = vpack.c.bf16 %v2494_v54, %v2493_v53  ;;  %v1906_v57 = vadd.f32 %v4739_v42, %v1905_v55  ;;  %v1907_v59 = vpop.f32.mrb[141].mxu1  ;;  %v2324_v60 = vpop.f32.mrb[141].mxu0 }
 0x233   : > { %v1908_v61 = vpop.f32.mrb[142].mxu1  ;;  %v2325_v0 = vpop.f32.mrb[142].mxu0 }
 0x234   : > { %3758 = vst [vmem:[%s4594_s14 + $0x110] sm:$0xff] %v3658_v56   ;;  %v2323_v62 = vadd.f32 %v2322_v58, %v1906_v57  ;;  %v1909_v63 = vadd.f32 %v4739_v42, %v1908_v61  ;;  %v1910_v1 = vpop.f32.mrb[143].mxu1  ;;  %v2327_v2 = vpop.f32.mrb[143].mxu0 }
 0x236   : > { %v2326_v3 = vadd.f32 %v2325_v0, %v1909_v63  ;;  %v2495_v4 = vmax.f32 %v2323_v62, 0.0 }
 0x238   : > { %v2496_v5 = vmax.f32 %v2326_v3, 0.0 }
 0x239   : > { %v1913_v6 = vpop.f32.mrb[144].mxu1  ;;  %v2330_v9 = vpop.f32.mrb[144].mxu0 }
 0x23a   : > { %v3663_v7 = vpack.c.bf16 %v2496_v5, %v2495_v4  ;;  %v1914_v8 = vadd.f32 %v4739_v42, %v1913_v6  ;;  %v1915_v10 = vpop.f32.mrb[145].mxu1  ;;  %v2332_v11 = vpop.f32.mrb[145].mxu0 }
 0x23b   : > { %v1916_v12 = vpop.f32.mrb[146].mxu1  ;;  %v2333_v16 = vpop.f32.mrb[146].mxu0 }
 0x23c   : > { %3759 = vst [vmem:[%s4594_s14 + $0x118] sm:$0xff] %v3663_v7   ;;  %v2331_v13 = vadd.f32 %v2330_v9, %v1914_v8  ;;  %v1917_v14 = vadd.f32 %v4739_v42, %v1916_v12  ;;  %v1918_v17 = vpop.f32.mrb[147].mxu1  ;;  %v2335_v18 = vpop.f32.mrb[147].mxu0 }
 0x23e   : > { %v2334_v19 = vadd.f32 %v2333_v16, %v1917_v14  ;;  %v2497_v20 = vmax.f32 %v2331_v13, 0.0 }
 0x240   : > { %v2498_v21 = vmax.f32 %v2334_v19, 0.0 }
 0x241   : > { %v1921_v22 = vpop.f32.mrb[148].mxu1  ;;  %v2338_v25 = vpop.f32.mrb[148].mxu0 }
 0x242   : > { %v3668_v23 = vpack.c.bf16 %v2498_v21, %v2497_v20  ;;  %v1922_v24 = vadd.f32 %v4739_v42, %v1921_v22  ;;  %v1923_v26 = vpop.f32.mrb[149].mxu1  ;;  %v2340_v27 = vpop.f32.mrb[149].mxu0 }
 0x243   : > { %v1924_v28 = vpop.f32.mrb[150].mxu1  ;;  %v2341_v31 = vpop.f32.mrb[150].mxu0 }
 0x244   : > { %3760 = vst [vmem:[%s4594_s14 + $0x120] sm:$0xff] %v3668_v23   ;;  %v2339_v29 = vadd.f32 %v2338_v25, %v1922_v24  ;;  %v1925_v30 = vadd.f32 %v4739_v42, %v1924_v28  ;;  %v1926_v32 = vpop.f32.mrb[151].mxu1  ;;  %v2343_v33 = vpop.f32.mrb[151].mxu0 }
 0x246   : > { %v2342_v34 = vadd.f32 %v2341_v31, %v1925_v30  ;;  %v2499_v35 = vmax.f32 %v2339_v29, 0.0 }
 0x248   : > { %v2500_v36 = vmax.f32 %v2342_v34, 0.0 }
 0x249   : > { %v1929_v37 = vpop.f32.mrb[152].mxu1  ;;  %v2346_v40 = vpop.f32.mrb[152].mxu0 }
 0x24a   : > { %v3673_v38 = vpack.c.bf16 %v2500_v36, %v2499_v35  ;;  %v1930_v39 = vadd.f32 %v4739_v42, %v1929_v37  ;;  %v1931_v41 = vpop.f32.mrb[153].mxu1  ;;  %v2348_v43 = vpop.f32.mrb[153].mxu0 }
 0x24b   : > { %v1932_v44 = vpop.f32.mrb[154].mxu1  ;;  %v2349_v47 = vpop.f32.mrb[154].mxu0 }
 0x24c   : > { %3761 = vst [vmem:[%s4594_s14 + $0x128] sm:$0xff] %v3673_v38   ;;  %v2347_v45 = vadd.f32 %v2346_v40, %v1930_v39  ;;  %v1933_v46 = vadd.f32 %v4739_v42, %v1932_v44  ;;  %v1934_v48 = vpop.f32.mrb[155].mxu1  ;;  %v2351_v15 = vpop.f32.mrb[155].mxu0 }
 0x24e   : > { %v2350_v49 = vadd.f32 %v2349_v47, %v1933_v46  ;;  %v2501_v50 = vmax.f32 %v2347_v45, 0.0 }
 0x250   : > { %v2502_v51 = vmax.f32 %v2350_v49, 0.0 }
 0x251   : > { %v1937_v52 = vpop.f32.mrb[156].mxu1  ;;  %v2354_v55 = vpop.f32.mrb[156].mxu0 }
 0x252   : > { %v3678_v53 = vpack.c.bf16 %v2502_v51, %v2501_v50  ;;  %v1938_v54 = vadd.f32 %v4739_v42, %v1937_v52  ;;  %v1939_v56 = vpop.f32.mrb[157].mxu1  ;;  %v2356_v57 = vpop.f32.mrb[157].mxu0 }
 0x253   : > { %v1940_v58 = vpop.f32.mrb[158].mxu1  ;;  %v2357_v61 = vpop.f32.mrb[158].mxu0 }
 0x254   : > { %3762 = vst [vmem:[%s4594_s14 + $0x130] sm:$0xff] %v3678_v53   ;;  %v2355_v59 = vadd.f32 %v2354_v55, %v1938_v54  ;;  %v1941_v60 = vadd.f32 %v4739_v42, %v1940_v58  ;;  %v1942_v62 = vpop.f32.mrb[159].mxu1  ;;  %v2359_v63 = vpop.f32.mrb[159].mxu0 }
 0x256   : > { %v2358_v0 = vadd.f32 %v2357_v61, %v1941_v60  ;;  %v2503_v1 = vmax.f32 %v2355_v59, 0.0 }
 0x258   : > { %v2504_v2 = vmax.f32 %v2358_v0, 0.0 }
 0x259   : > { %v1945_v3 = vpop.f32.mrb[160].mxu1  ;;  %v2362_v6 = vpop.f32.mrb[160].mxu0 }
 0x25a   : > { %v3683_v4 = vpack.c.bf16 %v2504_v2, %v2503_v1  ;;  %v1946_v5 = vadd.f32 %v4739_v42, %v1945_v3  ;;  %v1947_v7 = vpop.f32.mrb[161].mxu1  ;;  %v2364_v8 = vpop.f32.mrb[161].mxu0 }
 0x25b   : > { %v1948_v9 = vpop.f32.mrb[162].mxu1  ;;  %v2365_v12 = vpop.f32.mrb[162].mxu0 }
 0x25c   : > { %3763 = vst [vmem:[%s4594_s14 + $0x138] sm:$0xff] %v3683_v4   ;;  %v2363_v10 = vadd.f32 %v2362_v6, %v1946_v5  ;;  %v1949_v11 = vadd.f32 %v4739_v42, %v1948_v9  ;;  %v1950_v13 = vpop.f32.mrb[163].mxu1  ;;  %v2367_v14 = vpop.f32.mrb[163].mxu0 }
 0x25e   : > { %v2366_v16 = vadd.f32 %v2365_v12, %v1949_v11  ;;  %v2505_v17 = vmax.f32 %v2363_v10, 0.0 }
 0x260   : > { %v2506_v18 = vmax.f32 %v2366_v16, 0.0 }
 0x261   : > { %v1953_v19 = vpop.f32.mrb[164].mxu1  ;;  %v2370_v22 = vpop.f32.mrb[164].mxu0 }
 0x262   : > { %v3688_v20 = vpack.c.bf16 %v2506_v18, %v2505_v17  ;;  %v1954_v21 = vadd.f32 %v4739_v42, %v1953_v19  ;;  %v1955_v23 = vpop.f32.mrb[165].mxu1  ;;  %v2372_v24 = vpop.f32.mrb[165].mxu0 }
 0x263   : > { %v1956_v25 = vpop.f32.mrb[166].mxu1  ;;  %v2373_v28 = vpop.f32.mrb[166].mxu0 }
 0x264   : > { %3764 = vst [vmem:[%s4594_s14 + $0x140] sm:$0xff] %v3688_v20   ;;  %v2371_v26 = vadd.f32 %v2370_v22, %v1954_v21  ;;  %v1957_v27 = vadd.f32 %v4739_v42, %v1956_v25  ;;  %v1958_v29 = vpop.f32.mrb[167].mxu1  ;;  %v2375_v30 = vpop.f32.mrb[167].mxu0 }
 0x266   : > { %v2374_v31 = vadd.f32 %v2373_v28, %v1957_v27  ;;  %v2507_v32 = vmax.f32 %v2371_v26, 0.0 }
 0x268   : > { %v2508_v33 = vmax.f32 %v2374_v31, 0.0 }
 0x269   : > { %v1961_v34 = vpop.f32.mrb[168].mxu1  ;;  %v2378_v37 = vpop.f32.mrb[168].mxu0 }
 0x26a   : > { %v3693_v35 = vpack.c.bf16 %v2508_v33, %v2507_v32  ;;  %v1962_v36 = vadd.f32 %v4739_v42, %v1961_v34  ;;  %v1963_v38 = vpop.f32.mrb[169].mxu1  ;;  %v2380_v39 = vpop.f32.mrb[169].mxu0 }
 0x26b   : > { %v1964_v40 = vpop.f32.mrb[170].mxu1  ;;  %v2381_v44 = vpop.f32.mrb[170].mxu0 }
 0x26c   : > { %3765 = vst [vmem:[%s4594_s14 + $0x148] sm:$0xff] %v3693_v35   ;;  %v2379_v41 = vadd.f32 %v2378_v37, %v1962_v36  ;;  %v1965_v43 = vadd.f32 %v4739_v42, %v1964_v40  ;;  %v1966_v45 = vpop.f32.mrb[171].mxu1  ;;  %v2383_v46 = vpop.f32.mrb[171].mxu0 }
 0x26e   : > { %v2382_v47 = vadd.f32 %v2381_v44, %v1965_v43  ;;  %v2509_v48 = vmax.f32 %v2379_v41, 0.0 }
 0x270   : > { %v2510_v15 = vmax.f32 %v2382_v47, 0.0 }
 0x271   : > { %v1969_v49 = vpop.f32.mrb[172].mxu1  ;;  %v2386_v52 = vpop.f32.mrb[172].mxu0 }
 0x272   : > { %v3698_v50 = vpack.c.bf16 %v2510_v15, %v2509_v48  ;;  %v1970_v51 = vadd.f32 %v4739_v42, %v1969_v49  ;;  %v1971_v53 = vpop.f32.mrb[173].mxu1  ;;  %v2388_v54 = vpop.f32.mrb[173].mxu0 }
 0x273   : > { %v1972_v55 = vpop.f32.mrb[174].mxu1  ;;  %v2389_v58 = vpop.f32.mrb[174].mxu0 }
 0x274   : > { %3766 = vst [vmem:[%s4594_s14 + $0x150] sm:$0xff] %v3698_v50   ;;  %v2387_v56 = vadd.f32 %v2386_v52, %v1970_v51  ;;  %v1973_v57 = vadd.f32 %v4739_v42, %v1972_v55  ;;  %v1974_v59 = vpop.f32.mrb[175].mxu1  ;;  %v2391_v60 = vpop.f32.mrb[175].mxu0 }
 0x276   : > { %v2390_v61 = vadd.f32 %v2389_v58, %v1973_v57  ;;  %v2511_v62 = vmax.f32 %v2387_v56, 0.0 }
 0x278   : > { %v2512_v63 = vmax.f32 %v2390_v61, 0.0 }
 0x279   : > { %v1977_v0 = vpop.f32.mrb[176].mxu1  ;;  %v2394_v3 = vpop.f32.mrb[176].mxu0 }
 0x27a   : > { %v3703_v1 = vpack.c.bf16 %v2512_v63, %v2511_v62  ;;  %v1978_v2 = vadd.f32 %v4739_v42, %v1977_v0  ;;  %v1979_v4 = vpop.f32.mrb[177].mxu1  ;;  %v2396_v5 = vpop.f32.mrb[177].mxu0 }
 0x27b   : > { %v1980_v6 = vpop.f32.mrb[178].mxu1  ;;  %v2397_v9 = vpop.f32.mrb[178].mxu0 }
 0x27c   : > { %3767 = vst [vmem:[%s4594_s14 + $0x158] sm:$0xff] %v3703_v1   ;;  %v2395_v7 = vadd.f32 %v2394_v3, %v1978_v2  ;;  %v1981_v8 = vadd.f32 %v4739_v42, %v1980_v6  ;;  %v1982_v10 = vpop.f32.mrb[179].mxu1  ;;  %v2399_v11 = vpop.f32.mrb[179].mxu0 }
 0x27e   : > { %v2398_v12 = vadd.f32 %v2397_v9, %v1981_v8  ;;  %v2513_v13 = vmax.f32 %v2395_v7, 0.0 }
 0x280   : > { %v2514_v14 = vmax.f32 %v2398_v12, 0.0 }
 0x281   : > { %v1985_v16 = vpop.f32.mrb[180].mxu1  ;;  %v2402_v19 = vpop.f32.mrb[180].mxu0 }
 0x282   : > { %v3708_v17 = vpack.c.bf16 %v2514_v14, %v2513_v13  ;;  %v1986_v18 = vadd.f32 %v4739_v42, %v1985_v16  ;;  %v1987_v20 = vpop.f32.mrb[181].mxu1  ;;  %v2404_v21 = vpop.f32.mrb[181].mxu0 }
 0x283   : > { %v1988_v22 = vpop.f32.mrb[182].mxu1  ;;  %v2405_v25 = vpop.f32.mrb[182].mxu0 }
 0x284   : > { %3768 = vst [vmem:[%s4594_s14 + $0x160] sm:$0xff] %v3708_v17   ;;  %v2403_v23 = vadd.f32 %v2402_v19, %v1986_v18  ;;  %v1989_v24 = vadd.f32 %v4739_v42, %v1988_v22  ;;  %v1990_v26 = vpop.f32.mrb[183].mxu1  ;;  %v2407_v27 = vpop.f32.mrb[183].mxu0 }
 0x286   : > { %v2406_v28 = vadd.f32 %v2405_v25, %v1989_v24  ;;  %v2515_v29 = vmax.f32 %v2403_v23, 0.0 }
 0x288   : > { %v2516_v30 = vmax.f32 %v2406_v28, 0.0 }
 0x289   : > { %v1993_v31 = vpop.f32.mrb[184].mxu1  ;;  %v2410_v34 = vpop.f32.mrb[184].mxu0 }
 0x28a   : > { %v3713_v32 = vpack.c.bf16 %v2516_v30, %v2515_v29  ;;  %v1994_v33 = vadd.f32 %v4739_v42, %v1993_v31  ;;  %v1995_v35 = vpop.f32.mrb[185].mxu1  ;;  %v2412_v36 = vpop.f32.mrb[185].mxu0 }
 0x28b   : > { %v1996_v37 = vpop.f32.mrb[186].mxu1  ;;  %v2413_v40 = vpop.f32.mrb[186].mxu0 }
 0x28c   : > { %3769 = vst [vmem:[%s4594_s14 + $0x168] sm:$0xff] %v3713_v32   ;;  %v2411_v38 = vadd.f32 %v2410_v34, %v1994_v33  ;;  %v1997_v39 = vadd.f32 %v4739_v42, %v1996_v37  ;;  %v1998_v41 = vpop.f32.mrb[187].mxu1  ;;  %v2415_v43 = vpop.f32.mrb[187].mxu0 }
 0x28e   : > { %v2414_v44 = vadd.f32 %v2413_v40, %v1997_v39  ;;  %v2517_v45 = vmax.f32 %v2411_v38, 0.0 }
 0x290   : > { %v2518_v46 = vmax.f32 %v2414_v44, 0.0 }
 0x291   : > { %v2001_v47 = vpop.f32.mrb[188].mxu1  ;;  %v2418_v49 = vpop.f32.mrb[188].mxu0 }
 0x292   : > { %v3718_v48 = vpack.c.bf16 %v2518_v46, %v2517_v45  ;;  %v2002_v15 = vadd.f32 %v4739_v42, %v2001_v47  ;;  %v2003_v50 = vpop.f32.mrb[189].mxu1  ;;  %v2420_v51 = vpop.f32.mrb[189].mxu0 }
 0x293   : > { %v2004_v52 = vpop.f32.mrb[190].mxu1  ;;  %v2421_v55 = vpop.f32.mrb[190].mxu0 }
 0x294   : > { %3770 = vst [vmem:[%s4594_s14 + $0x170] sm:$0xff] %v3718_v48   ;;  %v2419_v53 = vadd.f32 %v2418_v49, %v2002_v15  ;;  %v2005_v54 = vadd.f32 %v4739_v42, %v2004_v52  ;;  %v2006_v56 = vpop.f32.mrb[191].mxu1  ;;  %v2423_v57 = vpop.f32.mrb[191].mxu0 }
 0x296   : > { %v2422_v58 = vadd.f32 %v2421_v55, %v2005_v54  ;;  %v2519_v59 = vmax.f32 %v2419_v53, 0.0 }
 0x298   : > { %v2520_v60 = vmax.f32 %v2422_v58, 0.0 }
 0x29a   : > { %v3723_v61 = vpack.c.bf16 %v2520_v60, %v2519_v59 }
 0x29c   : > { %3771 = vst [vmem:[%s4594_s14 + $0x178] sm:$0xff] %v3723_v61  }
 0x29d PF: > { %s13_s12 = sadd.s32 1, %s4300_s12  }
 0x29e   : > { %p10_p4 = scmp.ge.s32.totalorder %s13_s12, 6  }
 0x2a0   :  { %12 = sbr.rel (!%p10_p4) target bundleno = 1 (0x1), region = 62 }

</bundles_post_ra>
